<compile_context>
chip_gen: v6e
topology: v6e:2x2x1
jax: 0.10.0
libtpu: 0.0.40
codegen_flags: <defaults>
</compile_context>

<pallas_src>
import functools
import math

import jax
import jax.numpy as jnp
from jax.experimental import pallas as pl
from jax.experimental.pallas import tpu as pltpu

_LANE = 128
_SUBLANE = 8


def _round_up(x, m):
    return ((x + m - 1) // m) * m


def _apply_activation(y, activation):
    if activation == "identity":
        return y
    if activation == "tanh":
        return jnp.tanh(y)
    if activation == "relu":
        return jnp.maximum(y, 0.0)
    if activation == "gelu":
        # Exact (erf) GELU to match torch.nn.GELU default.
        return 0.5 * y * (1.0 + jax.lax.erf(y * (1.0 / math.sqrt(2.0))))
    if activation == "gelu_tanh":
        # Optional EUP-friendly approximation (changes numerics vs torch default).
        return jax.nn.gelu(y, approximate=True)
    if activation == "sin":
        return jnp.sin(y)
    raise ValueError(f"unknown activation {activation!r}")


# ----------------------------------------------------------------------------
# Fused MLP kernel: the whole network in one pallas_call
# ----------------------------------------------------------------------------
def _fused_mlp_kernel(x_ref, w_ref, b_ref, o_ref, *, num_layers, activation,
                      feats_on_sublanes, precision):
    # wide  : x (TB, F), w (L, F, F) in (in,out) layout, b (L, 1, F)
    # narrow: x (F, TB), w (L, F, F) in (out,in) layout, b (L, F, 1)
    h = x_ref[...]
    for l in range(num_layers):  # static unroll over layers
        w = w_ref[l]
        hm = h.astype(w_ref.dtype)  # bf16 MXU operand path if weights are bf16
        if feats_on_sublanes:
            h = jnp.dot(w, hm, preferred_element_type=jnp.float32,
                        precision=precision)
        else:
            h = jnp.dot(hm, w, preferred_element_type=jnp.float32,
                        precision=precision)
        h = h + b_ref[l]            # bias-add & activation stay in f32
        if l < num_layers - 1:
            h = _apply_activation(h, activation)
    o_ref[...] = h.astype(o_ref.dtype)


def fused_mlp(x, w_stack, b_stack, activation, *, feats_on_sublanes, out_dim,
              precision, max_tile_batch=1024):
    """Run the fused MLP. Returns (n, out_dim)."""
    n, d_in = x.shape
    L = w_stack.shape[0]
    F = w_stack.shape[-1]
    assert d_in <= F

    # Batch alignment: lanes (128) for the narrow/transposed path, sublanes (8)
    # for the wide lane-dense path.  Pad instead of asserting divisibility.
    batch_align = _LANE if feats_on_sublanes else _SUBLANE
    nb = _round_up(max(n, batch_align), batch_align)
    tile_b = min(max_tile_batch, nb)
    # Megacore (v7x): give the single "parallel" grid axis >= 2 steps if possible.
    if nb <= max_tile_batch and nb >= 2 * batch_align:
        tile_b = _round_up((nb + 1) // 2, batch_align)
    n_pad = _round_up(nb, tile_b)
    grid_b = n_pad // tile_b

    xf = x.astype(jnp.float32)
    if feats_on_sublanes:
        # Features on sublanes, batch on lanes: h^T layout.
        x_pad = jnp.zeros((F, n_pad), jnp.float32).at[:d_in, :n].set(xf.T)
        x_spec = pl.BlockSpec((F, tile_b), lambda i: (0, i))
        o_spec = pl.BlockSpec((F, tile_b), lambda i: (0, i))
        out_shape = jax.ShapeDtypeStruct((F, n_pad), jnp.float32)
        b_block = (L, F, 1)
    else:
        x_pad = jnp.zeros((n_pad, F), jnp.float32).at[:n, :d_in].set(xf)
        x_spec = pl.BlockSpec((tile_b, F), lambda i: (i, 0))
        o_spec = pl.BlockSpec((tile_b, F), lambda i: (i, 0))
        out_shape = jax.ShapeDtypeStruct((n_pad, F), jnp.float32)
        b_block = (L, 1, F)
    w_block = (L, F, F)

    # Explicit VMEM budget: (possibly double-buffered) weights + biases,
    # double-buffered activation in/out tiles, plus slack.
    w_bytes = int(w_stack.size) * w_stack.dtype.itemsize
    b_bytes = int(b_stack.size) * b_stack.dtype.itemsize
    act_tile_bytes = tile_b * F * 4
    vmem_needed = 2 * (w_bytes + b_bytes) + 4 * act_tile_bytes + (2 << 20)
    vmem_limit = int(min(max(vmem_needed, 32 << 20), 128 << 20))

    flops = 2 * n_pad * L * F * F
    transcendentals = 0 if activation in ("identity", "relu") \
        else n_pad * F * (L - 1)
    bytes_accessed = 2 * n_pad * F * 4 + w_bytes + b_bytes

    kernel = functools.partial(
        _fused_mlp_kernel, num_layers=L, activation=activation,
        feats_on_sublanes=feats_on_sublanes, precision=precision)

    def build(wb_pipeline_mode):
        extra = {} if wb_pipeline_mode is None else {
            "pipeline_mode": wb_pipeline_mode}
        # Weights/biases have a constant index_map -> fetched once; single
        # buffering halves their VMEM footprint.
        w_spec = pl.BlockSpec(w_block, lambda i: (0, 0, 0), **extra)
        b_spec = pl.BlockSpec(b_block, lambda i: (0, 0, 0), **extra)
        return pl.pallas_call(
            kernel,
            out_shape=out_shape,
            grid=(grid_b,),
            in_specs=[x_spec, w_spec, b_spec],
            out_specs=o_spec,
            compiler_params=pltpu.CompilerParams(
                dimension_semantics=("parallel",),
                vmem_limit_bytes=vmem_limit,
            ),
            cost_estimate=pl.CostEstimate(
                flops=int(flops),
                transcendentals=int(transcendentals),
                bytes_accessed=int(bytes_accessed),
            ),
        )

    try:
        y_pad = build(pl.Buffered(1))(x_pad, w_stack, b_stack)
    except Exception:
        # Fallback for JAX versions where single-buffered BlockSpecs are not
        # supported for pallas_call operands.
        y_pad = build(None)(x_pad, w_stack, b_stack)

    if feats_on_sublanes:
        return y_pad[:out_dim, :n].T
    return y_pad[:n, :out_dim]


# ----------------------------------------------------------------------------
# DNN module (parameter setup is plain-JAX glue)
# ----------------------------------------------------------------------------
class DNN:
    def __init__(self, layers, activation, key,
                 use_batch_norm=False, use_instance_norm=False,
                 matmul_dtype=jnp.float32):
        # TODO(synk): use_batch_norm / use_instance_norm not implemented
        # (defaults in the reference module are False).
        assert not use_batch_norm and not use_instance_norm
        self.layers = list(layers)
        self.depth = len(layers) - 1
        self.activation = activation
        self.matmul_dtype = jnp.dtype(matmul_dtype)
        # f32 weights -> HIGHEST precision to match torch f32 matmul semantics;
        # bf16 weights -> native bf16 MXU pass (fast path on v6e/v7x).
        self.precision = (jax.lax.Precision.HIGHEST
                          if self.matmul_dtype == jnp.float32
                          else jax.lax.Precision.DEFAULT)

        max_width = max(layers)
        # Narrow nets (e.g. the 32-wide NeuralSI PINN) keep features on the
        # sublane axis (padded to 8) and the batch on lanes, avoiding the 4x
        # VPU/EUP inflation of padding 32 -> 128 lanes.  Wide nets stay
        # lane-dense.
        self.feats_on_sublanes = max_width <= _LANE // 2
        self.feat = _round_up(max_width, _SUBLANE if self.feats_on_sublanes
                              else _LANE)

        raw_params = []            # unpadded (in,out) weights for the reference
        w_pads, b_pads = [], []
        for i in range(self.depth):
            fan_in, fan_out = layers[i], layers[i + 1]
            key, kw, kb = jax.random.split(key, 3)
            bound = 1.0 / math.sqrt(fan_in)
            # PyTorch nn.Linear default init: U(-1/sqrt(fan_in), 1/sqrt(fan_in))
            w_oi = jax.random.uniform(kw, (fan_out, fan_in), jnp.float32,
                                      -bound, bound)          # torch (out, in)
            b = jax.random.uniform(kb, (fan_out,), jnp.float32, -bound, bound)
            raw_params.append((w_oi.T, b))

            F = self.feat
            if self.feats_on_sublanes:
                # (out, in) layout for h^T = W @ h^T
                w_pad = jnp.zeros((F, F), self.matmul_dtype)
                w_pad = w_pad.at[:fan_out, :fan_in].set(
                    w_oi.astype(self.matmul_dtype))
                b_pad = jnp.zeros((F, 1), jnp.float32).at[:fan_out, 0].set(b)
            else:
                # (in, out) layout for h = h @ W
                w_pad = jnp.zeros((F, F), self.matmul_dtype)
                w_pad = w_pad.at[:fan_in, :fan_out].set(
                    w_oi.T.astype(self.matmul_dtype))
                b_pad = jnp.zeros((1, F), jnp.float32).at[0, :fan_out].set(b)
            w_pads.append(w_pad)
            b_pads.append(b_pad)

        self.params = raw_params
        self.w_stack = jnp.stack(w_pads, axis=0)   # (L, F, F)
        self.b_stack = jnp.stack(b_pads, axis=0)   # (L, F, 1) or (L, 1, F)

    def __call__(self, x):
        return fused_mlp(x, self.w_stack, self.b_stack, self.activation,
                         feats_on_sublanes=self.feats_on_sublanes,
                         out_dim=self.layers[-1],
                         precision=self.precision)


# Pure-JAX reference for the correctness check (full f32 precision, matching
# the PyTorch module's f32 forward).
def _ref_forward(dnn, x):
    out = x.astype(jnp.float32)
    for i, (w, b) in enumerate(dnn.params):
        out = jnp.dot(out, w, precision=jax.lax.Precision.HIGHEST) + b
        if i < dnn.depth - 1:
            out = _apply_activation(out, dnn.activation)
    return out


if __name__ == "__main__":
    key = jax.random.PRNGKey(0)
    key, kx, kp1, kp2 = jax.random.split(key, 4)

    batch = 16
    x = jax.random.normal(kx, (batch, 2), jnp.float32)

    # 1) The actual NeuralSI PINN shape: narrow 32-wide tanh net
    #    (exercises the feature-on-sublane / batch-on-lane path).
    layers1 = [2, 32, 32, 32, 1]
    dnn1 = DNN(layers1, activation="tanh", key=kp1)
    out1 = jax.block_until_ready(dnn1(x))
    ref1 = _ref_forward(dnn1, x)
    assert out1.shape == (batch, layers1[-1])
    assert jnp.allclose(out1, ref1, atol=2e-5, rtol=2e-5), "narrow-path mismatch"

    # 2) A wider net (exercises the lane-dense path, F padded to 256,
    #    grid split into 2 parallel batch tiles, exact-erf GELU).
    layers2 = [2, 160, 160, 1]
    dnn2 = DNN(layers2, activation="gelu", key=kp2)
    out2 = jax.block_until_ready(dnn2(x))
    ref2 = _ref_forward(dnn2, x)
    assert out2.shape == (batch, layers2[-1])
    assert jnp.allclose(out2, ref2, atol=2e-5, rtol=2e-5), "wide-path mismatch"

    print("KERNEL_OK")
</pallas_src>

<mosaic_0001>
module attributes {stable_mosaic.version = 11 : i64} {
  func.func @_fused_mlp_kernel(%arg0: i32, %arg1: memref<32x128xf32, #tpu.memory_space<vmem>>, %arg2: memref<4x32x32xf32, #tpu.memory_space<vmem>>, %arg3: memref<4x32x1xf32, #tpu.memory_space<vmem>>, %arg4: memref<32x128xf32, #tpu.memory_space<vmem>>) attributes {dimension_semantics = [#tpu.dimension_semantics<parallel>], iteration_bounds = array<i64: 1>, scalar_prefetch = 0 : i64, scratch_operands = 0 : i64, tpu.core_type = #tpu.core_type<tc>, window_params = [{transform_indices = @transform_0, window_bounds = array<i64: 32, 128>}, {pipeline_mode = #tpu.pipeline_mode<synchronous>, transform_indices = @transform_1, window_bounds = array<i64: 4, 32, 32>}, {pipeline_mode = #tpu.pipeline_mode<synchronous>, transform_indices = @transform_2, window_bounds = array<i64: 4, 32, 1>}, {transform_indices = @transform_3, window_bounds = array<i64: 32, 128>}]} {
    %c0 = arith.constant 0 : index
    %c0_0 = arith.constant 0 : index
    %0 = vector.load %arg1[%c0, %c0_0] : memref<32x128xf32, #tpu.memory_space<vmem>>, vector<32x128xf32>
    %c0_1 = arith.constant 0 : index
    %c0_2 = arith.constant 0 : index
    %c0_3 = arith.constant 0 : index
    %1 = vector.load %arg2[%c0_1, %c0_2, %c0_3] : memref<4x32x32xf32, #tpu.memory_space<vmem>>, vector<1x32x32xf32>
    %2 = vector.shape_cast %1 : vector<1x32x32xf32> to vector<32x32xf32>
    %cst = arith.constant dense<0.000000e+00> : vector<32x128xf32>
    %3 = tpu.matmul %2, %0, %cst {dimension_numbers = #tpu.dot_dimension_numbers<[1], [0], [0], [1], [0, 0, 1, 1], [], []>, precision = #tpu.contract_precision<fp32>} : vector<32x32xf32>, vector<32x128xf32>, vector<32x128xf32> -> vector<32x128xf32>
    %c0_4 = arith.constant 0 : index
    %c0_5 = arith.constant 0 : index
    %c0_6 = arith.constant 0 : index
    %4 = vector.load %arg3[%c0_4, %c0_5, %c0_6] : memref<4x32x1xf32, #tpu.memory_space<vmem>>, vector<1x32x1xf32>
    %5 = vector.shape_cast %4 : vector<1x32x1xf32> to vector<32x1xf32>
    %6 = vector.broadcast %5 : vector<32x1xf32> to vector<32x128xf32>
    %7 = arith.addf %3, %6 : vector<32x128xf32>
    %8 = math.tanh %7 : vector<32x128xf32>
    %c1 = arith.constant 1 : index
    %c0_7 = arith.constant 0 : index
    %c0_8 = arith.constant 0 : index
    %9 = vector.load %arg2[%c1, %c0_7, %c0_8] : memref<4x32x32xf32, #tpu.memory_space<vmem>>, vector<1x32x32xf32>
    %10 = vector.shape_cast %9 : vector<1x32x32xf32> to vector<32x32xf32>
    %cst_9 = arith.constant dense<0.000000e+00> : vector<32x128xf32>
    %11 = tpu.matmul %10, %8, %cst_9 {dimension_numbers = #tpu.dot_dimension_numbers<[1], [0], [0], [1], [0, 0, 1, 1], [], []>, precision = #tpu.contract_precision<fp32>} : vector<32x32xf32>, vector<32x128xf32>, vector<32x128xf32> -> vector<32x128xf32>
    %c1_10 = arith.constant 1 : index
    %c0_11 = arith.constant 0 : index
    %c0_12 = arith.constant 0 : index
    %12 = vector.load %arg3[%c1_10, %c0_11, %c0_12] : memref<4x32x1xf32, #tpu.memory_space<vmem>>, vector<1x32x1xf32>
    %13 = vector.shape_cast %12 : vector<1x32x1xf32> to vector<32x1xf32>
    %14 = vector.broadcast %13 : vector<32x1xf32> to vector<32x128xf32>
    %15 = arith.addf %11, %14 : vector<32x128xf32>
    %16 = math.tanh %15 : vector<32x128xf32>
    %c2 = arith.constant 2 : index
    %c0_13 = arith.constant 0 : index
    %c0_14 = arith.constant 0 : index
    %17 = vector.load %arg2[%c2, %c0_13, %c0_14] : memref<4x32x32xf32, #tpu.memory_space<vmem>>, vector<1x32x32xf32>
    %18 = vector.shape_cast %17 : vector<1x32x32xf32> to vector<32x32xf32>
    %cst_15 = arith.constant dense<0.000000e+00> : vector<32x128xf32>
    %19 = tpu.matmul %18, %16, %cst_15 {dimension_numbers = #tpu.dot_dimension_numbers<[1], [0], [0], [1], [0, 0, 1, 1], [], []>, precision = #tpu.contract_precision<fp32>} : vector<32x32xf32>, vector<32x128xf32>, vector<32x128xf32> -> vector<32x128xf32>
    %c2_16 = arith.constant 2 : index
    %c0_17 = arith.constant 0 : index
    %c0_18 = arith.constant 0 : index
    %20 = vector.load %arg3[%c2_16, %c0_17, %c0_18] : memref<4x32x1xf32, #tpu.memory_space<vmem>>, vector<1x32x1xf32>
    %21 = vector.shape_cast %20 : vector<1x32x1xf32> to vector<32x1xf32>
    %22 = vector.broadcast %21 : vector<32x1xf32> to vector<32x128xf32>
    %23 = arith.addf %19, %22 : vector<32x128xf32>
    %24 = math.tanh %23 : vector<32x128xf32>
    %c3 = arith.constant 3 : index
    %c0_19 = arith.constant 0 : index
    %c0_20 = arith.constant 0 : index
    %25 = vector.load %arg2[%c3, %c0_19, %c0_20] : memref<4x32x32xf32, #tpu.memory_space<vmem>>, vector<1x32x32xf32>
    %26 = vector.shape_cast %25 : vector<1x32x32xf32> to vector<32x32xf32>
    %cst_21 = arith.constant dense<0.000000e+00> : vector<32x128xf32>
    %27 = tpu.matmul %26, %24, %cst_21 {dimension_numbers = #tpu.dot_dimension_numbers<[1], [0], [0], [1], [0, 0, 1, 1], [], []>, precision = #tpu.contract_precision<fp32>} : vector<32x32xf32>, vector<32x128xf32>, vector<32x128xf32> -> vector<32x128xf32>
    %c3_22 = arith.constant 3 : index
    %c0_23 = arith.constant 0 : index
    %c0_24 = arith.constant 0 : index
    %28 = vector.load %arg3[%c3_22, %c0_23, %c0_24] : memref<4x32x1xf32, #tpu.memory_space<vmem>>, vector<1x32x1xf32>
    %29 = vector.shape_cast %28 : vector<1x32x1xf32> to vector<32x1xf32>
    %30 = vector.broadcast %29 : vector<32x1xf32> to vector<32x128xf32>
    %31 = arith.addf %27, %30 : vector<32x128xf32>
    %c0_25 = arith.constant 0 : index
    %c0_26 = arith.constant 0 : index
    %32 = vector.load %arg4[%c0_25, %c0_26] : memref<32x128xf32, #tpu.memory_space<vmem>>, vector<32x128xf32>
    tpu.vector_store %arg4[%c0_25, %c0_26], %31 {strides = array<i32>} : memref<32x128xf32, #tpu.memory_space<vmem>>, vector<32x128xf32>,
    return
  }
  func.func @transform_0(%arg0: i32) -> (i32, i32) {
    %c0_i32 = arith.constant 0 : i32
    %c0_i32_0 = arith.constant 0 : i32
    return %c0_i32, %arg0 : i32, i32
  }
  func.func @transform_1(%arg0: i32) -> (i32, i32, i32) {
    %c0_i32 = arith.constant 0 : i32
    %c0_i32_0 = arith.constant 0 : i32
    %c0_i32_1 = arith.constant 0 : i32
    %c0_i32_2 = arith.constant 0 : i32
    return %c0_i32, %c0_i32_0, %c0_i32_1 : i32, i32, i32
  }
  func.func @transform_2(%arg0: i32) -> (i32, i32, i32) {
    %c0_i32 = arith.constant 0 : i32
    %c0_i32_0 = arith.constant 0 : i32
    %c0_i32_1 = arith.constant 0 : i32
    %c0_i32_2 = arith.constant 0 : i32
    return %c0_i32, %c0_i32_0, %c0_i32_1 : i32, i32, i32
  }
  func.func @transform_3(%arg0: i32) -> (i32, i32) {
    %c0_i32 = arith.constant 0 : i32
    %c0_i32_0 = arith.constant 0 : i32
    return %c0_i32, %arg0 : i32, i32
  }
}

module attributes {stable_mosaic.version = 11 : i64} {
  func.func @_fused_mlp_kernel(%arg0: i32, %arg1: memref<32x128xf32, #tpu.memory_space<vmem>>, %arg2: memref<4x32x32xf32, #tpu.memory_space<vmem>>, %arg3: memref<4x32x1xf32, #tpu.memory_space<vmem>>, %arg4: memref<32x128xf32, #tpu.memory_space<vmem>>) attributes {dimension_semantics = [#tpu.dimension_semantics<parallel>], iteration_bounds = array<i64: 1>, scalar_prefetch = 0 : i64, scratch_operands = 0 : i64, tpu.core_type = #tpu.core_type<tc>, window_params = [{transform_indices = @transform_0, window_bounds = array<i64: 32, 128>}, {pipeline_mode = #tpu.pipeline_mode<synchronous>, transform_indices = @transform_1, window_bounds = array<i64: 4, 32, 32>}, {pipeline_mode = #tpu.pipeline_mode<synchronous>, transform_indices = @transform_2, window_bounds = array<i64: 4, 32, 1>}, {transform_indices = @transform_3, window_bounds = array<i64: 32, 128>}]} {
    %c0 = arith.constant 0 : index
    %c0_0 = arith.constant 0 : index
    %0 = vector.load %arg1[%c0, %c0_0] : memref<32x128xf32, #tpu.memory_space<vmem>>, vector<32x128xf32>
    %c0_1 = arith.constant 0 : index
    %c0_2 = arith.constant 0 : index
    %c0_3 = arith.constant 0 : index
    %1 = vector.load %arg2[%c0_1, %c0_2, %c0_3] : memref<4x32x32xf32, #tpu.memory_space<vmem>>, vector<1x32x32xf32>
    %2 = vector.shape_cast %1 : vector<1x32x32xf32> to vector<32x32xf32>
    %cst = arith.constant dense<0.000000e+00> : vector<32x128xf32>
    %3 = tpu.matmul %2, %0, %cst {dimension_numbers = #tpu.dot_dimension_numbers<[1], [0], [0], [1], [0, 0, 1, 1], [], []>, precision = #tpu.contract_precision<fp32>} : vector<32x32xf32>, vector<32x128xf32>, vector<32x128xf32> -> vector<32x128xf32>
    %c0_4 = arith.constant 0 : index
    %c0_5 = arith.constant 0 : index
    %c0_6 = arith.constant 0 : index
    %4 = vector.load %arg3[%c0_4, %c0_5, %c0_6] : memref<4x32x1xf32, #tpu.memory_space<vmem>>, vector<1x32x1xf32>
    %5 = vector.shape_cast %4 : vector<1x32x1xf32> to vector<32x1xf32>
    %6 = vector.broadcast %5 : vector<32x1xf32> to vector<32x128xf32>
    %7 = arith.addf %3, %6 : vector<32x128xf32>
    %8 = math.tanh %7 : vector<32x128xf32>
    %c1 = arith.constant 1 : index
    %c0_7 = arith.constant 0 : index
    %c0_8 = arith.constant 0 : index
    %9 = vector.load %arg2[%c1, %c0_7, %c0_8] : memref<4x32x32xf32, #tpu.memory_space<vmem>>, vector<1x32x32xf32>
    %10 = vector.shape_cast %9 : vector<1x32x32xf32> to vector<32x32xf32>
    %cst_9 = arith.constant dense<0.000000e+00> : vector<32x128xf32>
    %11 = tpu.matmul %10, %8, %cst_9 {dimension_numbers = #tpu.dot_dimension_numbers<[1], [0], [0], [1], [0, 0, 1, 1], [], []>, precision = #tpu.contract_precision<fp32>} : vector<32x32xf32>, vector<32x128xf32>, vector<32x128xf32> -> vector<32x128xf32>
    %c1_10 = arith.constant 1 : index
    %c0_11 = arith.constant 0 : index
    %c0_12 = arith.constant 0 : index
    %12 = vector.load %arg3[%c1_10, %c0_11, %c0_12] : memref<4x32x1xf32, #tpu.memory_space<vmem>>, vector<1x32x1xf32>
    %13 = vector.shape_cast %12 : vector<1x32x1xf32> to vector<32x1xf32>
    %14 = vector.broadcast %13 : vector<32x1xf32> to vector<32x128xf32>
    %15 = arith.addf %11, %14 : vector<32x128xf32>
    %16 = math.tanh %15 : vector<32x128xf32>
    %c2 = arith.constant 2 : index
    %c0_13 = arith.constant 0 : index
    %c0_14 = arith.constant 0 : index
    %17 = vector.load %arg2[%c2, %c0_13, %c0_14] : memref<4x32x32xf32, #tpu.memory_space<vmem>>, vector<1x32x32xf32>
    %18 = vector.shape_cast %17 : vector<1x32x32xf32> to vector<32x32xf32>
    %cst_15 = arith.constant dense<0.000000e+00> : vector<32x128xf32>
    %19 = tpu.matmul %18, %16, %cst_15 {dimension_numbers = #tpu.dot_dimension_numbers<[1], [0], [0], [1], [0, 0, 1, 1], [], []>, precision = #tpu.contract_precision<fp32>} : vector<32x32xf32>, vector<32x128xf32>, vector<32x128xf32> -> vector<32x128xf32>
    %c2_16 = arith.constant 2 : index
    %c0_17 = arith.constant 0 : index
    %c0_18 = arith.constant 0 : index
    %20 = vector.load %arg3[%c2_16, %c0_17, %c0_18] : memref<4x32x1xf32, #tpu.memory_space<vmem>>, vector<1x32x1xf32>
    %21 = vector.shape_cast %20 : vector<1x32x1xf32> to vector<32x1xf32>
    %22 = vector.broadcast %21 : vector<32x1xf32> to vector<32x128xf32>
    %23 = arith.addf %19, %22 : vector<32x128xf32>
    %24 = math.tanh %23 : vector<32x128xf32>
    %c3 = arith.constant 3 : index
    %c0_19 = arith.constant 0 : index
    %c0_20 = arith.constant 0 : index
    %25 = vector.load %arg2[%c3, %c0_19, %c0_20] : memref<4x32x32xf32, #tpu.memory_space<vmem>>, vector<1x32x32xf32>
    %26 = vector.shape_cast %25 : vector<1x32x32xf32> to vector<32x32xf32>
    %cst_21 = arith.constant dense<0.000000e+00> : vector<32x128xf32>
    %27 = tpu.matmul %26, %24, %cst_21 {dimension_numbers = #tpu.dot_dimension_numbers<[1], [0], [0], [1], [0, 0, 1, 1], [], []>, precision = #tpu.contract_precision<fp32>} : vector<32x32xf32>, vector<32x128xf32>, vector<32x128xf32> -> vector<32x128xf32>
    %c3_22 = arith.constant 3 : index
    %c0_23 = arith.constant 0 : index
    %c0_24 = arith.constant 0 : index
    %28 = vector.load %arg3[%c3_22, %c0_23, %c0_24] : memref<4x32x1xf32, #tpu.memory_space<vmem>>, vector<1x32x1xf32>
    %29 = vector.shape_cast %28 : vector<1x32x1xf32> to vector<32x1xf32>
    %30 = vector.broadcast %29 : vector<32x1xf32> to vector<32x128xf32>
    %31 = arith.addf %27, %30 : vector<32x128xf32>
    %c0_25 = arith.constant 0 : index
    %c0_26 = arith.constant 0 : index
    %32 = vector.load %arg4[%c0_25, %c0_26] : memref<32x128xf32, #tpu.memory_space<vmem>>, vector<32x128xf32>
    tpu.vector_store %arg4[%c0_25, %c0_26], %31 {strides = array<i32>} : memref<32x128xf32, #tpu.memory_space<vmem>>, vector<32x128xf32>,
    return
  }
  func.func @transform_0(%arg0: i32) -> (i32, i32) {
    %c0_i32 = arith.constant 0 : i32
    %c0_i32_0 = arith.constant 0 : i32
    return %c0_i32, %arg0 : i32, i32
  }
  func.func @transform_1(%arg0: i32) -> (i32, i32, i32) {
    %c0_i32 = arith.constant 0 : i32
    %c0_i32_0 = arith.constant 0 : i32
    %c0_i32_1 = arith.constant 0 : i32
    %c0_i32_2 = arith.constant 0 : i32
    return %c0_i32, %c0_i32_0, %c0_i32_1 : i32, i32, i32
  }
  func.func @transform_2(%arg0: i32) -> (i32, i32, i32) {
    %c0_i32 = arith.constant 0 : i32
    %c0_i32_0 = arith.constant 0 : i32
    %c0_i32_1 = arith.constant 0 : i32
    %c0_i32_2 = arith.constant 0 : i32
    return %c0_i32, %c0_i32_0, %c0_i32_1 : i32, i32, i32
  }
  func.func @transform_3(%arg0: i32) -> (i32, i32) {
    %c0_i32 = arith.constant 0 : i32
    %c0_i32_0 = arith.constant 0 : i32
    return %c0_i32, %arg0 : i32, i32
  }
}

</mosaic_0001>

<bundles_post_ra>
// kernel: tpu_custom_call.1
= control target key start
LH: loop header
LB: loop body
LE: loop exit
PB: predicated region body
PF: predicated region fallthrough
CT: control target
= control target key end

     0   :  { %8 = vsyncpa [#allocation3], 0  ;;  %s3883_s0 = inlined_call_operand.hbm [shape: f32[32,128], index: 0, kind: input, shape index: {}]   ;;  %s3884_s1 = inlined_call_operand.vmem [shape: f32[4,32,32], index: 1, kind: input, shape index: {}]   ;;  %s3885_s2 = inlined_call_operand.vmem [shape: f32[4,32,1], index: 2, kind: input, shape index: {}]   ;;  %s3886_s3 = inlined_call_operand.hbm [shape: f32[32,128], index: 3, kind: output, shape index: {}]  }
   0x1   :  { %9 = vsyncpa [#allocation4], 0  ;;  %s3316_s12 = smov [#allocation2]  }
   0x2   :  { %s15_s13 = sshll.u32 %s3316_s12, 4  ;;  %s16_s13 = int_to_ptr.vmem [resolvable:$true] %s15_s13 }
   0x3   :  { %s3280_s14 = scalar_lea.vmem %s16_s13, 512  ;;  %p3285_p1 = scmp.lt.s32.totalorder %s16_s13, %s16_s13 }
   0x4   :  { %p3281_p0 = scmp.ne.s32.totalorder %s16_s13, %s3280_s14  ;;  %p3286_p2 = scmp.lt.s32.totalorder %s3280_s14, %s3280_s14 }
   0x6   :  { %p3287_p3 = por %p3286_p2, %p3285_p1 }
   0x8   :  { %p3288_p4 = pnand %p3287_p3, %p3281_p0 }
   0xa   :  { %3291 = shalt.err (!%p3288_p4)
}
   0xb   :  { %s3317_s15 = smov 128   ;;  %s3318_s16 = smov 8  }
   0xc   :  { %21 = dma.hbm_to_vmem [thread:$0]  %s3883_s0, 512, %s16_s13, [#allocation3], %s3317_s15, %s3317_s15, %s3318_s16  }
   0xd   :  { %3312 = dma.done.wait [#allocation3], 512  }
   0xe   :  { %3313 = vsyncadd [#allocation3], 4294966784  ;;  %v3319_v0 = vmov 0   ;;  %vm61_vm0 = vcmask 261120   ;;  %v32_v1 = vld [vmem:[#allocation2 + $0x18] sm:$0xff]  ;;  %v31_v2 = vld [vmem:[#allocation2 + $0x10] sm:$0xff] }
   0xf   :  { %3246 = vset.pattern.permute.xlu0 %v3319_v0  ;;  %3247 = vset.pattern.permute.xlu1 %v3319_v0  ;;  %v30_v3 = vld [vmem:[#allocation2 + $0x8] sm:$0xff]  ;;  %v3347_v4 = vand.u32 4294901760, %v32_v1  ;;  %v3349_v5 = vand.u32 4294901760, %v31_v2  ;;  %v29_v7 = vld [vmem:[#allocation2] sm:$0xff]  ;;  %v35_v13 = vld [vmem:[%s3884_s1 + $0x10] sm:$0xff] }
  0x10   :  { %v3351_v6 = vand.u32 4294901760, %v30_v3  ;;  %v33_v8 = vld [vmem:[%s3884_s1] sm:$0xff]  ;;  %v34_v9 = vld [vmem:[%s3884_s1 + $0x8] sm:$0xff]  ;;  %v3359_v10 = vand.u32 4294901760, %v29_v7  ;;  %v36_v14 = vld [vmem:[%s3884_s1 + $0x18] sm:$0xff]  ;;  %v69_v22 = vsel %vm61_vm0, %v35_v13, 0 }
  0x11   :  { %v63_v11 = vsel %vm61_vm0, %v33_v8, 0  ;;  %v66_v12 = vsel %vm61_vm0, %v34_v9, 0  ;;  %v40_v15 = vld [vmem:[%s3885_s2 + $0x18] sm:$0xff]  ;;  %2905 = vmatprep.subr.mxu0 %v3347_v4  ;;  %v209_v16 = vsub.f32 %v32_v1, %v3347_v4  ;;  %v3379_v19 = vsub.f32 %v31_v2, %v3349_v5  ;;  %v38_v20 = vld [vmem:[%s3885_s2 + $0x8] sm:$0xff]  ;;  %v39_v25 = vld [vmem:[%s3885_s2 + $0x10] sm:$0xff] }
  0x12   :  { %v3374_v17 = vand.u32 4294901760, %v63_v11  ;;  %v3376_v18 = vand.u32 4294901760, %v66_v12  ;;  %58 = vperm.xlu0 %3246, %v40_v15   ;;  %2906 = vmatpush3.msra.mxu0 %v3347_v4  ;;  %v3386_v21 = vsub.f32 %v30_v3, %v3351_v6  ;;  %v72_v23 = vsel %vm61_vm0, %v36_v14, 0  ;;  %v37_v34 = vld [vmem:[%s3885_s2] sm:$0xff]  ;;  %v2696_v46 = vld [vmem:[%s3885_s2 + $0x38] sm:$0xff]  ;;  %v2694_v58 = vld [vmem:[%s3885_s2 + $0x28] sm:$0xff] }
  0x13   :  { %v3391_v24 = vsub.f32 %v29_v7, %v3359_v10  ;;  %48 = vperm.xlu1 %3247, %v38_v20   ;;  %2907 = vmatprep.subr.mxu0 %v3349_v5  ;;  %v3397_v26 = vand.u32 4294901760, %v209_v16  ;;  %v3406_v29 = vand.u32 4294901760, %v3379_v19  ;;  %v3413_v31 = vand.u32 4294901760, %v69_v22  ;;  %v2695_v59 = vld [vmem:[%s3885_s2 + $0x30] sm:$0xff]  ;;  %v2704_v60 = vld [vmem:[%s3885_s2 + $0x58] sm:$0xff]  ;;  %v2693_v61 = vld [vmem:[%s3885_s2 + $0x20] sm:$0xff] }
  0x14   :  { %v3400_v27 = vsub.f32 %v63_v11, %v3374_v17  ;;  %v3403_v28 = vsub.f32 %v66_v12, %v3376_v18  ;;  %2927 = vmatprep.mubr.f32.mxu1 %v3374_v17  ;;  %2908 = vmatpush3.msra.mxu0 %v3349_v5  ;;  %v3411_v30 = vand.u32 4294901760, %v3386_v21  ;;  %v3415_v32 = vand.u32 4294901760, %v72_v23  ;;  %v2702_v62 = vld [vmem:[%s3885_s2 + $0x48] sm:$0xff]  ;;  %v2703_v63 = vld [vmem:[%s3885_s2 + $0x50] sm:$0xff]  ;;  %v2709_v0 = vld [vmem:[%s3885_s2 + $0x60] sm:$0xff] }
  0x15   :  { %v3418_v33 = vand.u32 4294901760, %v3391_v24  ;;  %2909 = vmatprep.subr.mxu0 %v3351_v6  ;;  %v211_v35 = vsub.f32 %v209_v16, %v3397_v26  ;;  %v218_v38 = vsub.f32 %v3379_v19, %v3406_v29  ;;  %v3433_v40 = vsub.f32 %v69_v22, %v3413_v31  ;;  %v2701_v1 = vld [vmem:[%s3885_s2 + $0x40] sm:$0xff]  ;;  %v2711_v2 = vld [vmem:[%s3885_s2 + $0x70] sm:$0xff]  ;;  %v2710_v3 = vld [vmem:[%s3885_s2 + $0x68] sm:$0xff] }
  0x16   :  { %v145_v36 = vand.u32 4294901760, %v3400_v27  ;;  %v155_v37 = vand.u32 4294901760, %v3403_v28  ;;  %53 = vperm.xlu0 %3246, %v39_v25   ;;  %2910 = vmatpush3.msra.mxu0 %v3351_v6  ;;  %v225_v39 = vsub.f32 %v3386_v21, %v3411_v30  ;;  %v3436_v41 = vsub.f32 %v72_v23, %v3415_v32 }
  0x17   :  { %2911 = vmatprep.subr.mxu0 %v3359_v10  ;;  %v212_v42 = vand.u32 4294901760, %v211_v35  ;;  %v219_v45 = vand.u32 4294901760, %v218_v38  ;;  %43 = vperm.xlu1 %3247, %v37_v34   ;;  %v165_v47 = vand.u32 4294901760, %v3433_v40  ;;  %v232_v49 = vsub.f32 %v3391_v24, %v3418_v33 }
  0x18   :  { %v146_v43 = vsub.f32 %v3400_v27, %v145_v36  ;;  %v156_v44 = vsub.f32 %v3403_v28, %v155_v37  ;;  %2912 = vmatpush3.msra.mxu0 %v3359_v10  ;;  %v175_v48 = vand.u32 4294901760, %v3436_v41  ;;  %v226_v52 = vand.u32 4294901760, %v225_v39 }
  0x19   :  { %2919 = vmatprep.subr.mxu1 %v212_v42  ;;  %2933 = vmatprep.subr.mxu0 %v209_v16  ;;  %v166_v53 = vsub.f32 %v3433_v40, %v165_v47  ;;  %v233_v57 = vand.u32 4294901760, %v232_v49 }
  0x1a   :  { %v147_v50 = vand.u32 4294901760, %v146_v43  ;;  %v157_v51 = vand.u32 4294901760, %v156_v44  ;;  %2920 = vmatpush3.msra.mxu1 %v212_v42  ;;  %v176_v54 = vsub.f32 %v3436_v41, %v175_v48  ;;  %719 = vperm.xlu0 %3246, %v2696_v46  }
  0x1b   :  { %2921 = vmatprep.subr.mxu1 %v219_v45  ;;  %v167_v55 = vand.u32 4294901760, %v166_v53  ;;  %714 = vperm.xlu1 %3247, %v2695_v59  }
  0x1c   :  { %2913 = vmatprep.mubr.f32.mxu0 %v147_v50  ;;  %2922 = vmatpush3.msra.mxu1 %v219_v45  ;;  %v177_v56 = vand.u32 4294901760, %v176_v54 }
  0x1d   :  { %2914 = vmatmul.mubr.f32.vlgmr.msra.gmra.mxu0 %v157_v51  ;;  %2923 = vmatprep.subr.mxu1 %v226_v52 }
  0x1e   :  { %2934 = vmatpush3.msra.mxu0 %v209_v16  ;;  %2916 = vmatprep.mubr.f32.mxu0 %v167_v55 }
  0x1f   :  { %2935 = vmatprep.subr.mxu0 %v3379_v19  ;;  %2924 = vmatpush3.msra.mxu1 %v226_v52 }
  0x20   :  { %2936 = vmatpush3.msra.mxu0 %v3379_v19  ;;  %2925 = vmatprep.subr.mxu1 %v233_v57 }
  0x21   :  { %2917 = vmatmul.mubr.f32.gmra.mxu0 %v177_v56  ;;  %2937 = vmatprep.subr.mxu0 %v3386_v21 }
  0x22   :  { %2926 = vmatpush3.msra.mxu1 %v233_v57  ;;  %2938 = vmatpush3.msra.mxu0 %v3386_v21 }
  0x23   :  { %2928 = vmatmul.mubr.f32.vlgmr.msra.gmra.mxu1 %v3376_v18  ;;  %2939 = vmatprep.subr.mxu0 %v3391_v24 }
  0x24   :  { %2947 = vmatprep.subr.mxu1 %v3347_v4  ;;  %2940 = vmatpush3.msra.mxu0 %v3391_v24 }
  0x25   :  { %2941 = vmatprep.mubr.f32.mxu0 %v3400_v27  ;;  %2948 = vmatpush3.msra.mxu1 %v3347_v4 }
  0x26   :  { %2942 = vmatmul.mubr.f32.vlgmr.msra.gmra.mxu0 %v3403_v28  ;;  %2949 = vmatprep.subr.mxu1 %v3349_v5 }
  0x27   :  { %2961 = vmatprep.subr.mxu0 %v3397_v26  ;;  %2930 = vmatprep.mubr.f32.mxu1 %v3413_v31 }
  0x28   :  { %2950 = vmatpush3.msra.mxu1 %v3349_v5  ;;  %2962 = vmatpush3.msra.mxu0 %v3397_v26 }
  0x29   :  { %2931 = vmatmul.mubr.f32.gmra.mxu1 %v3415_v32  ;;  %2951 = vmatprep.subr.mxu1 %v3351_v6 }
  0x2a   :  { %2963 = vmatprep.subr.mxu0 %v3406_v29  ;;  %2944 = vmatprep.mubr.f32.mxu0 %v3433_v40 }
  0x2b   :  { %2952 = vmatpush3.msra.mxu1 %v3351_v6  ;;  %2964 = vmatpush3.msra.mxu0 %v3406_v29 }
  0x2c   :  { %2953 = vmatprep.subr.mxu1 %v3359_v10  ;;  %2945 = vmatmul.mubr.f32.gmra.mxu0 %v3436_v41 }
  0x2d   :  { %2965 = vmatprep.subr.mxu0 %v3411_v30  ;;  %2954 = vmatpush3.msra.mxu1 %v3359_v10 }
  0x2e   :  { %2955 = vmatprep.mubr.f32.mxu1 %v145_v36  ;;  %2966 = vmatpush3.msra.mxu0 %v3411_v30 }
  0x2f   :  { %2956 = vmatmul.mubr.f32.vlgmr.msra.gmra.mxu1 %v155_v37  ;;  %2967 = vmatprep.subr.mxu0 %v3418_v33 }
  0x30   :  { %2975 = vmatprep.subr.mxu1 %v3347_v4  ;;  %2968 = vmatpush3.msra.mxu0 %v3418_v33 }
  0x31   :  { %2969 = vmatprep.mubr.f32.mxu0 %v3374_v17  ;;  %2976 = vmatpush3.msra.mxu1 %v3347_v4  ;;  %v2712_v4 = vld [vmem:[%s3885_s2 + $0x78] sm:$0xff] }
  0x32   :  { %2970 = vmatmul.mubr.f32.vlgmr.msra.gmra.mxu0 %v3376_v18  ;;  %2977 = vmatprep.subr.mxu1 %v3349_v5 }
  0x33   :  { %2958 = vmatprep.mubr.f32.mxu1 %v165_v47  ;;  %2978 = vmatpush3.msra.mxu1 %v3349_v5  ;;  %v2689_v5 = vld [vmem:[%s3884_s1 + $0x20] sm:$0xff] }
  0x34   :  { %2972 = vmatprep.mubr.f32.mxu0 %v3413_v31  ;;  %2959 = vmatmul.mubr.f32.gmra.mxu1 %v175_v48 }
  0x35   :  { %2979 = vmatprep.subr.mxu1 %v3351_v6  ;;  %2983 = vmatprep.mubr.f32.mxu1 %v3374_v17 }
  0x36   :  { %2980 = vmatpush3.msra.mxu1 %v3351_v6  ;;  %2973 = vmatmul.mubr.f32.gmra.mxu0 %v3415_v32  ;;  %v723_v6 = vsel %vm61_vm0, %v2689_v5, 0 }
  0x37   :  { %2981 = vmatprep.subr.mxu1 %v3359_v10  ;;  %709 = vperm.xlu0 %3246, %v2694_v58   ;;  %v3545_v7 = vand.u32 4294901760, %v723_v6 }
  0x38   :  { %2982 = vmatpush3.msra.mxu1 %v3359_v10  ;;  %704 = vperm.xlu1 %3247, %v2693_v61  }
  0x39   :  { %2984 = vmatmul.mubr.f32.vlgmr.msra.gmra.mxu1 %v3376_v18  ;;  %v3548_v8 = vsub.f32 %v723_v6, %v3545_v7 }
  0x3a   :  { %2986 = vmatprep.mubr.f32.mxu1 %v3413_v31 }
  0x3b   :  { %1379 = vperm.xlu0 %3246, %v2704_v60   ;;  %v805_v9 = vand.u32 4294901760, %v3548_v8 }
  0x3c   :  { %1374 = vperm.xlu1 %3247, %v2703_v63  }
  0x3d   :  { %2987 = vmatmul.mubr.f32.gmra.mxu1 %v3415_v32  ;;  %v806_v10 = vsub.f32 %v3548_v8, %v805_v9 }
  0x3e   :  { %3011 = vmatprep.mubr.f32.mxu1 %v3545_v7 }
  0x3f   :  { %1369 = vperm.xlu0 %3246, %v2702_v62   ;;  %v807_v11 = vand.u32 4294901760, %v806_v10  ;;  %v2690_v62 = vld [vmem:[%s3884_s1 + $0x28] sm:$0xff] }
  0x40   :  { %1364 = vperm.xlu1 %3247, %v2701_v1   ;;  %v726_v1 = vsel %vm61_vm0, %v2690_v62, 0 }
  0x41   :  { %2997 = vmatprep.mubr.f32.mxu0 %v807_v11 }
  0x43   :  { %2024 = vperm.xlu0 %3246, %v2709_v0  }
  0x44   :  { %2029 = vperm.xlu1 %3247, %v2710_v3   ;;  %v2692_v3 = vld [vmem:[%s3884_s1 + $0x38] sm:$0xff] }
  0x45   :  { %v732_v6 = vsel %vm61_vm0, %v2692_v3, 0 }
  0x47   :  { %2034 = vperm.xlu0 %3246, %v2711_v2   ;;  %v2691_v2 = vld [vmem:[%s3884_s1 + $0x30] sm:$0xff] }
  0x48   :  { %2039 = vperm.xlu1 %3247, %v2712_v4   ;;  %v3565_v4 = vand.u32 4294901760, %v726_v1  ;;  %v729_v5 = vsel %vm61_vm0, %v2691_v2, 0 }
  0x49   :  { %v3569_v10 = vand.u32 4294901760, %v729_v5 }
  0x4a   :  { %v3572_v11 = vsub.f32 %v726_v1, %v3565_v4 }
  0x8d   :  { %v59_v23 = vpop.permute.xlu0 %58 }
  0x8e   :  { %v49_v19 = vpop.permute.xlu1 %48 }
  0x91   :  { %v54_v33 = vpop.permute.xlu0 %53 }
  0x92   :  { %v44_v25 = vpop.permute.xlu1 %43 }
  0xdd   :  { %v2915_v12 = vpop.f32.mrf.mxu0 }
  0xde   :  { %v160_v22 = vadd.f32 %v2915_v12, %v49_v19 }
  0xdf   :  { %v149_v13 = vpop.f32.mrf.mxu0 }
  0xe0   :  { %v150_v27 = vadd.f32 %v149_v13, %v44_v25  ;;  %v3574_v13 = vand.u32 4294901760, %v732_v6 }
  0xe1   :  { %v2918_v14 = vpop.f32.mrf.mxu0 }
  0xe2   :  { %v180_v28 = vadd.f32 %v2918_v14, %v59_v23 }
  0xe3   :  { %v169_v15 = vpop.f32.mrf.mxu0  ;;  %v2929_v16 = vpop.f32.mrf.mxu1 }
  0xe4   :  { %v277_v29 = vadd.f32 %v2929_v16, %v160_v22  ;;  %v170_v35 = vadd.f32 %v169_v15, %v54_v33  ;;  %v3579_v16 = vsub.f32 %v729_v5, %v3569_v10 }
  0xe5   :  { %v270_v17 = vpop.f32.mrf.mxu1 }
  0xe6   :  { %v2943_v18 = vpop.f32.mrf.mxu0  ;;  %v271_v32 = vadd.f32 %v270_v17, %v150_v27  ;;  %v815_v17 = vand.u32 4294901760, %v3572_v11  ;;  %v825_v23 = vand.u32 4294901760, %v3579_v16 }
  0xe7   :  { %v376_v36 = vadd.f32 %v2943_v18, %v277_v29 }
  0xe8   :  { %v368_v21 = vpop.f32.mrf.mxu0 }
  0xe9   :  { %v2932_v20 = vpop.f32.mrf.mxu1  ;;  %v369_v39 = vadd.f32 %v368_v21, %v271_v32  ;;  %v826_v32 = vsub.f32 %v3579_v16, %v825_v23 }
  0xea   :  { %v289_v37 = vadd.f32 %v2932_v20, %v180_v28  ;;  %v3585_v20 = vsub.f32 %v732_v6, %v3574_v13 }
  0xeb   :  { %v282_v24 = vpop.f32.mrf.mxu1 }
  0xec   :  { %v2946_v26 = vpop.f32.mrf.mxu0  ;;  %v283_v40 = vadd.f32 %v282_v24, %v170_v35  ;;  %v835_v28 = vand.u32 4294901760, %v3585_v20 }
  0xed   :  { %v390_v44 = vadd.f32 %v2946_v26, %v289_v37  ;;  %v816_v26 = vsub.f32 %v3572_v11, %v815_v17 }
  0xee   :  { %v382_v30 = vpop.f32.mrf.mxu0  ;;  %v836_v37 = vsub.f32 %v3585_v20, %v835_v28 }
  0xef   :  { %v2957_v31 = vpop.f32.mrf.mxu1  ;;  %v383_v48 = vadd.f32 %v382_v30, %v283_v40 }
  0xf0   :  { %v475_v41 = vadd.f32 %v2957_v31, %v376_v36 }
  0xf1   :  { %v466_v34 = vpop.f32.mrf.mxu1 }
  0xf2   :  { %v2971_v38 = vpop.f32.mrf.mxu0  ;;  %v467_v45 = vadd.f32 %v466_v34, %v369_v39  ;;  %v817_v34 = vand.u32 4294901760, %v816_v26 }
  0xf3   :  { %v580_v49 = vadd.f32 %v2971_v38, %v475_v41  ;;  %v827_v41 = vand.u32 4294901760, %v826_v32 }
  0xf4   :  { %v573_v42 = vpop.f32.mrf.mxu0  ;;  %v2960_v43 = vpop.f32.mrf.mxu1 }
  0xf5   :  { %v491_v50 = vadd.f32 %v2960_v43, %v390_v44  ;;  %v574_v52 = vadd.f32 %v573_v42, %v467_v45  ;;  %v837_v44 = vand.u32 4294901760, %v836_v37 }
  0xf6   :  { %v482_v46 = vpop.f32.mrf.mxu1  ;;  %v2974_v47 = vpop.f32.mrf.mxu0 }
  0xf7   :  { %v483_v53 = vadd.f32 %v482_v46, %v383_v48  ;;  %v592_v57 = vadd.f32 %v2974_v47, %v491_v50 }
  0xf8   :  { %v585_v55 = vpop.f32.mrf.mxu0 }
  0xf9   :  { %v2985_v51 = vpop.f32.mrf.mxu1  ;;  %v586_v60 = vadd.f32 %v585_v55, %v483_v53 }
  0xfa   :  { %v673_v54 = vadd.f32 %v2985_v51, %v580_v49 }
  0xfb   :  { %v666_v56 = vpop.f32.mrf.mxu1 }
  0xfc   :  { %3248 = vtanh.f32 %v673_v54  ;;  %v667_v58 = vadd.f32 %v666_v56, %v574_v52 }
  0xfd   :  { %v2988_v59 = vpop.f32.mrf.mxu1 }
  0xfe   :  { %3250 = vtanh.f32 %v667_v58  ;;  %v685_v61 = vadd.f32 %v2988_v59, %v592_v57  ;;  %v720_v57 = vpop.permute.xlu0 %719 }
  0xff   :  { %v678_v63 = vpop.f32.mrf.mxu1 }
 0x100   :  { %3252 = vtanh.f32 %v685_v61  ;;  %v679_v0 = vadd.f32 %v678_v63, %v586_v60  ;;  %v715_v60 = vpop.permute.xlu1 %714 }
 0x102   :  { %3254 = vtanh.f32 %v679_v0  ;;  %v710_v63 = vpop.permute.xlu0 %709 }
 0x104   :  { %v705_v2 = vpop.permute.xlu1 %704 }
 0x109   :  { %v3249_v12 = vpop.eup %3248 }
 0x10a   :  { %v3576_v15 = vand.u32 4294901760, %v3249_v12 }
 0x10b   :  { %v3251_v14 = vpop.eup %3250 }
 0x10c   :  { %v3582_v19 = vand.u32 4294901760, %v3251_v14  ;;  %v883_v24 = vsub.f32 %v3249_v12, %v3576_v15 }
 0x10d   :  { %v3253_v18 = vpop.eup %3252 }
 0x10e   :  { %v3587_v21 = vand.u32 4294901760, %v3253_v18  ;;  %v890_v29 = vsub.f32 %v3251_v14, %v3582_v19  ;;  %v884_v33 = vand.u32 4294901760, %v883_v24 }
 0x10f   :  { %v3255_v22 = vpop.eup %3254 }
 0x110   :  { %v3591_v25 = vand.u32 4294901760, %v3255_v22  ;;  %2989 = vmatprep.subr.mxu0 %v3587_v21  ;;  %v869_v27 = vsub.f32 %v3253_v18, %v3587_v21  ;;  %v891_v38 = vand.u32 4294901760, %v890_v29  ;;  %v885_v42 = vsub.f32 %v883_v24, %v884_v33 }
 0x111   :  { %2990 = vmatpush3.msra.mxu0 %v3587_v21 }
 0x112   :  { %2991 = vmatprep.subr.mxu0 %v3591_v25  ;;  %v870_v30 = vand.u32 4294901760, %v869_v27  ;;  %v876_v31 = vsub.f32 %v3255_v22, %v3591_v25  ;;  %v892_v45 = vsub.f32 %v890_v29, %v891_v38  ;;  %v886_v46 = vand.u32 4294901760, %v885_v42 }
 0x113   :  { %2992 = vmatpush3.msra.mxu0 %v3591_v25 }
 0x114   :  { %2993 = vmatprep.subr.mxu0 %v3576_v15  ;;  %v871_v35 = vsub.f32 %v869_v27, %v870_v30  ;;  %v877_v36 = vand.u32 4294901760, %v876_v31  ;;  %v893_v47 = vand.u32 4294901760, %v892_v45  ;;  %v2699_v45 = vld [vmem:[%s3884_s1 + $0x50] sm:$0xff] }
 0x115   :  { %2994 = vmatpush3.msra.mxu0 %v3576_v15 }
 0x116   :  { %2995 = vmatprep.subr.mxu0 %v3582_v19  ;;  %v872_v39 = vand.u32 4294901760, %v871_v35  ;;  %v878_v40 = vsub.f32 %v876_v31, %v877_v36 }
 0x117   :  { %2996 = vmatpush3.msra.mxu0 %v3582_v19 }
 0x118   :  { %2998 = vmatmul.mubr.f32.vlgmr.msra.gmra.mxu0 %v817_v34  ;;  %3003 = vmatprep.subr.mxu1 %v872_v39  ;;  %v879_v43 = vand.u32 4294901760, %v878_v40 }
 0x119   :  { %3017 = vmatprep.subr.mxu0 %v869_v27  ;;  %3004 = vmatpush3.msra.mxu1 %v872_v39 }
 0x11a   :  { %3018 = vmatpush3.msra.mxu0 %v869_v27  ;;  %3005 = vmatprep.subr.mxu1 %v879_v43 }
 0x11b   :  { %3019 = vmatprep.subr.mxu0 %v876_v31  ;;  %3000 = vmatprep.mubr.f32.mxu0 %v827_v41  ;;  %v2698_v41 = vld [vmem:[%s3884_s1 + $0x48] sm:$0xff] }
 0x11c   :  { %3006 = vmatpush3.msra.mxu1 %v879_v43  ;;  %3020 = vmatpush3.msra.mxu0 %v876_v31 }
 0x11d   :  { %3001 = vmatmul.mubr.f32.gmra.mxu0 %v837_v44  ;;  %3007 = vmatprep.subr.mxu1 %v886_v46  ;;  %v1386_v44 = vsel %vm61_vm0, %v2698_v41, 0 }
 0x11e   :  { %3021 = vmatprep.subr.mxu0 %v883_v24  ;;  %3008 = vmatpush3.msra.mxu1 %v886_v46  ;;  %v2700_v46 = vld [vmem:[%s3884_s1 + $0x58] sm:$0xff] }
 0x11f   :  { %3022 = vmatpush3.msra.mxu0 %v883_v24  ;;  %3009 = vmatprep.subr.mxu1 %v893_v47 }
 0x120   :  { %3023 = vmatprep.subr.mxu0 %v890_v29  ;;  %3010 = vmatpush3.msra.mxu1 %v893_v47  ;;  %v3677_v47 = vand.u32 4294901760, %v1386_v44 }
 0x121   :  { %3024 = vmatpush3.msra.mxu0 %v890_v29  ;;  %3012 = vmatmul.mubr.f32.vlgmr.msra.gmra.mxu1 %v3565_v4 }
 0x122   :  { %3025 = vmatprep.mubr.f32.mxu0 %v3548_v8  ;;  %3031 = vmatprep.subr.mxu1 %v3587_v21  ;;  %v2697_v8 = vld [vmem:[%s3884_s1 + $0x40] sm:$0xff] }
 0x123   :  { %3045 = vmatprep.subr.mxu0 %v870_v30  ;;  %3026 = vmatmul.mubr.f32.vlgmr.msra.gmra.mxu0 %v3572_v11 }
 0x124   :  { %3032 = vmatpush3.msra.mxu1 %v3587_v21  ;;  %3046 = vmatpush3.msra.mxu0 %v870_v30 }
 0x125   :  { %3033 = vmatprep.subr.mxu1 %v3591_v25  ;;  %3047 = vmatprep.subr.mxu0 %v877_v36 }
 0x126   :  { %3014 = vmatprep.mubr.f32.mxu1 %v3569_v10  ;;  %3034 = vmatpush3.msra.mxu1 %v3591_v25 }
 0x127   :  { %3048 = vmatpush3.msra.mxu0 %v877_v36  ;;  %3015 = vmatmul.mubr.f32.gmra.mxu1 %v3574_v13 }
 0x128   :  { %3035 = vmatprep.subr.mxu1 %v3576_v15  ;;  %3049 = vmatprep.subr.mxu0 %v884_v33 }
 0x129   :  { %3028 = vmatprep.mubr.f32.mxu0 %v3579_v16  ;;  %3036 = vmatpush3.msra.mxu1 %v3576_v15 }
 0x12a   :  { %3050 = vmatpush3.msra.mxu0 %v884_v33  ;;  %3037 = vmatprep.subr.mxu1 %v3582_v19 }
 0x12b   :  { %3029 = vmatmul.mubr.f32.gmra.mxu0 %v3585_v20  ;;  %3051 = vmatprep.subr.mxu0 %v891_v38 }
 0x12c   :  { %3038 = vmatpush3.msra.mxu1 %v3582_v19  ;;  %3039 = vmatprep.mubr.f32.mxu1 %v805_v9  ;;  %v1383_v9 = vsel %vm61_vm0, %v2697_v8, 0  ;;  %v1389_v8 = vsel %vm61_vm0, %v2699_v45, 0 }
 0x12d   :  { %3052 = vmatpush3.msra.mxu0 %v891_v38  ;;  %3040 = vmatmul.mubr.f32.vlgmr.msra.gmra.mxu1 %v815_v17  ;;  %v3657_v48 = vand.u32 4294901760, %v1383_v9 }
 0x12e   :  { %3059 = vmatprep.subr.mxu1 %v3587_v21  ;;  %3053 = vmatprep.mubr.f32.mxu0 %v3545_v7 }
 0x12f   :  { %3060 = vmatpush3.msra.mxu1 %v3587_v21  ;;  %3054 = vmatmul.mubr.f32.vlgmr.msra.gmra.mxu0 %v3565_v4  ;;  %v3660_v49 = vsub.f32 %v1383_v9, %v3657_v48  ;;  %v1392_v9 = vsel %vm61_vm0, %v2700_v46, 0 }
 0x130   :  { %3061 = vmatprep.subr.mxu1 %v3591_v25  ;;  %3042 = vmatprep.mubr.f32.mxu1 %v825_v23 }
 0x131   :  { %3062 = vmatpush3.msra.mxu1 %v3591_v25  ;;  %3056 = vmatprep.mubr.f32.mxu0 %v3569_v10 }
 0x132   :  { %3043 = vmatmul.mubr.f32.gmra.mxu1 %v835_v28  ;;  %3063 = vmatprep.subr.mxu1 %v3576_v15 }
 0x133   :  { %3064 = vmatpush3.msra.mxu1 %v3576_v15  ;;  %3057 = vmatmul.mubr.f32.gmra.mxu0 %v3574_v13 }
 0x134   :  { %3065 = vmatprep.subr.mxu1 %v3582_v19  ;;  %3067 = vmatprep.mubr.f32.mxu1 %v3545_v7  ;;  %v1465_v7 = vand.u32 4294901760, %v3660_v49 }
 0x135   :  { %3066 = vmatpush3.msra.mxu1 %v3582_v19 }
 0x136   :  { %3068 = vmatmul.mubr.f32.vlgmr.msra.gmra.mxu1 %v3565_v4  ;;  %v1466_v50 = vsub.f32 %v3660_v49, %v1465_v7 }
 0x137   :  { %3070 = vmatprep.mubr.f32.mxu1 %v3569_v10 }
 0x138   :  { %v1467_v51 = vand.u32 4294901760, %v1466_v50  ;;  %v3681_v50 = vand.u32 4294901760, %v1389_v8 }
 0x13a   :  { %3071 = vmatmul.mubr.f32.gmra.mxu1 %v3574_v13  ;;  %3081 = vmatprep.mubr.f32.mxu0 %v1467_v51  ;;  %v3684_v51 = vsub.f32 %v1386_v44, %v3677_v47 }
 0x13b   :  { %3095 = vmatprep.mubr.f32.mxu1 %v3657_v48 }
 0x1d8   :  { %v2999_v52 = vpop.f32.mrf.mxu0 }
 0x1d9   :  { %v820_v0 = vadd.f32 %v2999_v52, %v710_v63 }
 0x1da   :  { %v809_v53 = vpop.f32.mrf.mxu0 }
 0x1db   :  { %v810_v3 = vadd.f32 %v809_v53, %v705_v2  ;;  %v3686_v53 = vand.u32 4294901760, %v1392_v9 }
 0x1dd   :  { %v3002_v54 = vpop.f32.mrf.mxu0 }
 0x1de   :  { %v840_v6 = vadd.f32 %v3002_v54, %v720_v57  ;;  %v1475_v57 = vand.u32 4294901760, %v3684_v51 }
 0x1df   :  { %v829_v55 = vpop.f32.mrf.mxu0 }
 0x1e0   :  { %v830_v13 = vadd.f32 %v829_v55, %v715_v60  ;;  %v3697_v60 = vsub.f32 %v1392_v9, %v3686_v53  ;;  %v1476_v2 = vsub.f32 %v3684_v51, %v1475_v57 }
 0x1e1   :  { %v3013_v56 = vpop.f32.mrf.mxu1 }
 0x1e2   :  { %v937_v4 = vadd.f32 %v3013_v56, %v820_v0  ;;  %v3691_v56 = vsub.f32 %v1389_v8, %v3681_v50 }
 0x1e3   :  { %v930_v58 = vpop.f32.mrf.mxu1  ;;  %v3027_v59 = vpop.f32.mrf.mxu0 }
 0x1e4   :  { %v931_v10 = vadd.f32 %v930_v58, %v810_v3  ;;  %v1036_v14 = vadd.f32 %v3027_v59, %v937_v4  ;;  %v1485_v63 = vand.u32 4294901760, %v3691_v56  ;;  %v1495_v4 = vand.u32 4294901760, %v3697_v60 }
 0x1e5   :  { %v1028_v62 = vpop.f32.mrf.mxu0 }
 0x1e6   :  { %v1029_v18 = vadd.f32 %v1028_v62, %v931_v10 }
 0x1e7   :  { %v3016_v61 = vpop.f32.mrf.mxu1 }
 0x1e8   :  { %v949_v15 = vadd.f32 %v3016_v61, %v840_v6 }
 0x1e9   :  { %v942_v1 = vpop.f32.mrf.mxu1 }
 0x1ea   :  { %v943_v19 = vadd.f32 %v942_v1, %v830_v13  ;;  %v1477_v13 = vand.u32 4294901760, %v1476_v2 }
 0x1eb   :  { %v3030_v5 = vpop.f32.mrf.mxu0 }
 0x1ec   :  { %v1050_v23 = vadd.f32 %v3030_v5, %v949_v15 }
 0x1ed   :  { %v1042_v11 = vpop.f32.mrf.mxu0  ;;  %v3041_v12 = vpop.f32.mrf.mxu1 }
 0x1ee   :  { %v1135_v20 = vadd.f32 %v3041_v12, %v1036_v14  ;;  %v1043_v27 = vadd.f32 %v1042_v11, %v943_v19  ;;  %v1486_v11 = vsub.f32 %v3691_v56, %v1485_v63 }
 0x1ef   :  { %v1126_v16 = vpop.f32.mrf.mxu1  ;;  %v3055_v17 = vpop.f32.mrf.mxu0 }
 0x1f0   :  { %v1127_v24 = vadd.f32 %v1126_v16, %v1029_v18  ;;  %v1240_v28 = vadd.f32 %v3055_v17, %v1135_v20  ;;  %v1496_v16 = vsub.f32 %v3697_v60, %v1495_v4  ;;  %v1487_v20 = vand.u32 4294901760, %v1486_v11 }
 0x1f1   :  { %v1233_v21 = vpop.f32.mrf.mxu0 }
 0x1f2   :  { %v3044_v22 = vpop.f32.mrf.mxu1  ;;  %v1234_v31 = vadd.f32 %v1233_v21, %v1127_v24 }
 0x1f3   :  { %v3058_v26 = vpop.f32.mrf.mxu0  ;;  %v1151_v29 = vadd.f32 %v3044_v22, %v1050_v23  ;;  %v1497_v23 = vand.u32 4294901760, %v1496_v16 }
 0x1f4   :  { %v1142_v25 = vpop.f32.mrf.mxu1 }
 0x1f5   :  { %v1143_v32 = vadd.f32 %v1142_v25, %v1043_v27  ;;  %v1245_v34 = vpop.f32.mrf.mxu0  ;;  %v1252_v36 = vadd.f32 %v3058_v26, %v1151_v29 }
 0x1f6   :  { %v3069_v30 = vpop.f32.mrf.mxu1 }
 0x1f7   :  { %v1333_v33 = vadd.f32 %v3069_v30, %v1240_v28  ;;  %v1246_v39 = vadd.f32 %v1245_v34, %v1143_v32 }
 0x1f8   :  { %v1326_v35 = vpop.f32.mrf.mxu1 }
 0x1f9   :  { %3256 = vtanh.f32 %v1333_v33  ;;  %v1327_v37 = vadd.f32 %v1326_v35, %v1234_v31 }
 0x1fa   :  { %v3072_v38 = vpop.f32.mrf.mxu1 }
 0x1fb   :  { %3258 = vtanh.f32 %v1327_v37  ;;  %v1345_v40 = vadd.f32 %v3072_v38, %v1252_v36  ;;  %v1380_v36 = vpop.permute.xlu0 %1379 }
 0x1fc   :  { %v1338_v42 = vpop.f32.mrf.mxu1 }
 0x1fd   :  { %3260 = vtanh.f32 %v1345_v40  ;;  %v1339_v43 = vadd.f32 %v1338_v42, %v1246_v39  ;;  %v1375_v39 = vpop.permute.xlu1 %1374 }
 0x1ff   :  { %3262 = vtanh.f32 %v1339_v43  ;;  %v1370_v42 = vpop.permute.xlu0 %1369 }
 0x201   :  { %v1365_v45 = vpop.permute.xlu1 %1364 }
 0x206   :  { %v3257_v52 = vpop.eup %3256 }
 0x207   :  { %v3688_v55 = vand.u32 4294901760, %v3257_v52 }
 0x208   :  { %v3259_v54 = vpop.eup %3258 }
 0x209   :  { %v3694_v59 = vand.u32 4294901760, %v3259_v54  ;;  %v1543_v0 = vsub.f32 %v3257_v52, %v3688_v55 }
 0x20a   :  { %v3261_v58 = vpop.eup %3260 }
 0x20b   :  { %v3699_v61 = vand.u32 4294901760, %v3261_v58  ;;  %v1550_v5 = vsub.f32 %v3259_v54, %v3694_v59  ;;  %v1544_v12 = vand.u32 4294901760, %v1543_v0 }
 0x20c   :  { %v3263_v62 = vpop.eup %3262 }
 0x20d   :  { %v3703_v1 = vand.u32 4294901760, %v3263_v62  ;;  %3073 = vmatprep.subr.mxu0 %v3699_v61  ;;  %v1529_v3 = vsub.f32 %v3261_v58, %v3699_v61  ;;  %v1551_v17 = vand.u32 4294901760, %v1550_v5  ;;  %v1545_v21 = vsub.f32 %v1543_v0, %v1544_v12 }
 0x20e   :  { %3074 = vmatpush3.msra.mxu0 %v3699_v61 }
 0x20f   :  { %3075 = vmatprep.subr.mxu0 %v3703_v1  ;;  %v1530_v6 = vand.u32 4294901760, %v1529_v3  ;;  %v1536_v10 = vsub.f32 %v3263_v62, %v3703_v1  ;;  %v1552_v24 = vsub.f32 %v1550_v5, %v1551_v17  ;;  %v1546_v25 = vand.u32 4294901760, %v1545_v21 }
 0x210   :  { %3076 = vmatpush3.msra.mxu0 %v3703_v1 }
 0x211   :  { %3077 = vmatprep.subr.mxu0 %v3688_v55  ;;  %v1531_v14 = vsub.f32 %v1529_v3, %v1530_v6  ;;  %v1537_v15 = vand.u32 4294901760, %v1536_v10  ;;  %v1553_v26 = vand.u32 4294901760, %v1552_v24  ;;  %v2707_v24 = vld [vmem:[%s3884_s1 + $0x70] sm:$0xff] }
 0x212   :  { %3078 = vmatpush3.msra.mxu0 %v3688_v55 }
 0x213   :  { %3079 = vmatprep.subr.mxu0 %v3694_v59  ;;  %v1532_v18 = vand.u32 4294901760, %v1531_v14  ;;  %v1538_v19 = vsub.f32 %v1536_v10, %v1537_v15 }
 0x214   :  { %3080 = vmatpush3.msra.mxu0 %v3694_v59 }
 0x215   :  { %3082 = vmatmul.mubr.f32.vlgmr.msra.gmra.mxu0 %v1477_v13  ;;  %3087 = vmatprep.subr.mxu1 %v1532_v18  ;;  %v1539_v22 = vand.u32 4294901760, %v1538_v19 }
 0x216   :  { %3101 = vmatprep.subr.mxu0 %v1529_v3  ;;  %3088 = vmatpush3.msra.mxu1 %v1532_v18 }
 0x217   :  { %3102 = vmatpush3.msra.mxu0 %v1529_v3  ;;  %3089 = vmatprep.subr.mxu1 %v1539_v22 }
 0x218   :  { %3103 = vmatprep.subr.mxu0 %v1536_v10  ;;  %3084 = vmatprep.mubr.f32.mxu0 %v1487_v20  ;;  %v2706_v20 = vld [vmem:[%s3884_s1 + $0x68] sm:$0xff] }
 0x219   :  { %3090 = vmatpush3.msra.mxu1 %v1539_v22  ;;  %3104 = vmatpush3.msra.mxu0 %v1536_v10 }
 0x21a   :  { %3085 = vmatmul.mubr.f32.gmra.mxu0 %v1497_v23  ;;  %3091 = vmatprep.subr.mxu1 %v1546_v25  ;;  %v2046_v23 = vsel %vm61_vm0, %v2706_v20, 0 }
 0x21b   :  { %3105 = vmatprep.subr.mxu0 %v1543_v0  ;;  %3092 = vmatpush3.msra.mxu1 %v1546_v25  ;;  %v2708_v25 = vld [vmem:[%s3884_s1 + $0x78] sm:$0xff] }
 0x21c   :  { %3106 = vmatpush3.msra.mxu0 %v1543_v0  ;;  %3093 = vmatprep.subr.mxu1 %v1553_v26 }
 0x21d   :  { %3107 = vmatprep.subr.mxu0 %v1550_v5  ;;  %3094 = vmatpush3.msra.mxu1 %v1553_v26  ;;  %v3789_v26 = vand.u32 4294901760, %v2046_v23 }
 0x21e   :  { %3108 = vmatpush3.msra.mxu0 %v1550_v5  ;;  %3096 = vmatmul.mubr.f32.vlgmr.msra.gmra.mxu1 %v3677_v47 }
 0x21f   :  { %3109 = vmatprep.mubr.f32.mxu0 %v3660_v49  ;;  %3115 = vmatprep.subr.mxu1 %v3699_v61  ;;  %v2705_v49 = vld [vmem:[%s3884_s1 + $0x60] sm:$0xff]  ;;  %s3320_s1 = smov [#allocation5]  }
 0x220   :  { %3129 = vmatprep.subr.mxu0 %v1530_v6  ;;  %3110 = vmatmul.mubr.f32.vlgmr.msra.gmra.mxu0 %v3684_v51  ;;  %s2677_s29 = sshll.u32 %s3320_s1, 4  ;;  %s2678_s29 = int_to_ptr.vmem [resolvable:$true] %s2677_s29 }
 0x221   :  { %3116 = vmatpush3.msra.mxu1 %v3699_v61  ;;  %3130 = vmatpush3.msra.mxu0 %v1530_v6  ;;  %s3292_s30 = scalar_lea.vmem %s2678_s29, 512  ;;  %p3297_p6 = scmp.lt.s32.totalorder %s2678_s29, %s2678_s29 }
 0x222   :  { %3117 = vmatprep.subr.mxu1 %v3703_v1  ;;  %3131 = vmatprep.subr.mxu0 %v1537_v15  ;;  %p3293_p5 = scmp.ne.s32.totalorder %s2678_s29, %s3292_s30  ;;  %p3298_p7 = scmp.lt.s32.totalorder %s3292_s30, %s3292_s30 }
 0x223   :  { %3098 = vmatprep.mubr.f32.mxu1 %v3681_v50  ;;  %3118 = vmatpush3.msra.mxu1 %v3703_v1 }
 0x224   :  { %3132 = vmatpush3.msra.mxu0 %v1537_v15  ;;  %3099 = vmatmul.mubr.f32.gmra.mxu1 %v3686_v53  ;;  %p3299_p8 = por %p3298_p7, %p3297_p6 }
 0x225   :  { %3119 = vmatprep.subr.mxu1 %v3688_v55  ;;  %3133 = vmatprep.subr.mxu0 %v1544_v12 }
 0x226   :  { %3112 = vmatprep.mubr.f32.mxu0 %v3691_v56  ;;  %3120 = vmatpush3.msra.mxu1 %v3688_v55  ;;  %p3300_p9 = pnand %p3299_p8, %p3293_p5 }
 0x227   :  { %3134 = vmatpush3.msra.mxu0 %v1544_v12  ;;  %3121 = vmatprep.subr.mxu1 %v3694_v59 }
 0x228   :  { %3113 = vmatmul.mubr.f32.gmra.mxu0 %v3697_v60  ;;  %3135 = vmatprep.subr.mxu0 %v1551_v17 }
 0x229   :  { %3122 = vmatpush3.msra.mxu1 %v3694_v59  ;;  %3123 = vmatprep.mubr.f32.mxu1 %v1465_v7  ;;  %v2043_v7 = vsel %vm61_vm0, %v2705_v49, 0  ;;  %v2049_v49 = vsel %vm61_vm0, %v2707_v24, 0 }
 0x22a   :  { %3136 = vmatpush3.msra.mxu0 %v1551_v17  ;;  %3124 = vmatmul.mubr.f32.vlgmr.msra.gmra.mxu1 %v1475_v57  ;;  %v3769_v27 = vand.u32 4294901760, %v2043_v7 }
 0x22b   :  { %3143 = vmatprep.subr.mxu1 %v3699_v61  ;;  %3137 = vmatprep.mubr.f32.mxu0 %v3657_v48 }
 0x22c   :  { %3144 = vmatpush3.msra.mxu1 %v3699_v61  ;;  %3138 = vmatmul.mubr.f32.vlgmr.msra.gmra.mxu0 %v3677_v47  ;;  %v3772_v28 = vsub.f32 %v2043_v7, %v3769_v27  ;;  %v2052_v7 = vsel %vm61_vm0, %v2708_v25, 0 }
 0x22d   :  { %3145 = vmatprep.subr.mxu1 %v3703_v1  ;;  %3126 = vmatprep.mubr.f32.mxu1 %v1485_v63 }
 0x22e   :  { %3146 = vmatpush3.msra.mxu1 %v3703_v1  ;;  %3140 = vmatprep.mubr.f32.mxu0 %v3681_v50 }
 0x22f   :  { %3127 = vmatmul.mubr.f32.gmra.mxu1 %v1495_v4  ;;  %3147 = vmatprep.subr.mxu1 %v3688_v55 }
 0x230   :  { %3148 = vmatpush3.msra.mxu1 %v3688_v55  ;;  %3141 = vmatmul.mubr.f32.gmra.mxu0 %v3686_v53 }
 0x231   :  { %3149 = vmatprep.subr.mxu1 %v3694_v59  ;;  %3151 = vmatprep.mubr.f32.mxu1 %v3657_v48  ;;  %v2125_v48 = vand.u32 4294901760, %v3772_v28 }
 0x232   :  { %3150 = vmatpush3.msra.mxu1 %v3694_v59 }
 0x233   :  { %3152 = vmatmul.mubr.f32.vlgmr.msra.gmra.mxu1 %v3677_v47  ;;  %v2126_v29 = vsub.f32 %v3772_v28, %v2125_v48 }
 0x234   :  { %3154 = vmatprep.mubr.f32.mxu1 %v3681_v50 }
 0x235   :  { %v2127_v30 = vand.u32 4294901760, %v2126_v29  ;;  %v3793_v29 = vand.u32 4294901760, %v2049_v49 }
 0x237   :  { %3155 = vmatmul.mubr.f32.gmra.mxu1 %v3686_v53  ;;  %3165 = vmatprep.mubr.f32.mxu0 %v2127_v30  ;;  %v3796_v30 = vsub.f32 %v2046_v23, %v3789_v26 }
 0x238   :  { %3179 = vmatprep.mubr.f32.mxu1 %v3769_v27 }
 0x2d5   :  { %v3083_v31 = vpop.f32.mrf.mxu0 }
 0x2d6   :  { %v1480_v43 = vadd.f32 %v3083_v31, %v1370_v42 }
 0x2d7   :  { %v1469_v32 = vpop.f32.mrf.mxu0 }
 0x2d8   :  { %v1470_v46 = vadd.f32 %v1469_v32, %v1365_v45  ;;  %v3798_v32 = vand.u32 4294901760, %v2052_v7 }
 0x2da   :  { %v3086_v33 = vpop.f32.mrf.mxu0 }
 0x2db   :  { %v1500_v9 = vadd.f32 %v3086_v33, %v1380_v36  ;;  %v2135_v36 = vand.u32 4294901760, %v3796_v30 }
 0x2dc   :  { %v1489_v34 = vpop.f32.mrf.mxu0 }
 0x2dd   :  { %v1490_v53 = vadd.f32 %v1489_v34, %v1375_v39  ;;  %v3809_v39 = vsub.f32 %v2052_v7, %v3798_v32  ;;  %v2136_v45 = vsub.f32 %v3796_v30, %v2135_v36 }
 0x2de   :  { %v3097_v35 = vpop.f32.mrf.mxu1 }
 0x2df   :  { %v1597_v47 = vadd.f32 %v3097_v35, %v1480_v43  ;;  %v3803_v35 = vsub.f32 %v2049_v49, %v3793_v29 }
 0x2e0   :  { %v1590_v37 = vpop.f32.mrf.mxu1  ;;  %v3111_v38 = vpop.f32.mrf.mxu0 }
 0x2e1   :  { %v1591_v50 = vadd.f32 %v1590_v37, %v1470_v46  ;;  %v1696_v54 = vadd.f32 %v3111_v38, %v1597_v47  ;;  %v2145_v42 = vand.u32 4294901760, %v3803_v35  ;;  %v2155_v47 = vand.u32 4294901760, %v3809_v39 }
 0x2e2   :  { %v1688_v41 = vpop.f32.mrf.mxu0 }
 0x2e3   :  { %v1689_v58 = vadd.f32 %v1688_v41, %v1591_v50 }
 0x2e4   :  { %v3100_v40 = vpop.f32.mrf.mxu1 }
 0x2e5   :  { %v1609_v55 = vadd.f32 %v3100_v40, %v1500_v9 }
 0x2e6   :  { %v1602_v44 = vpop.f32.mrf.mxu1 }
 0x2e7   :  { %v1603_v59 = vadd.f32 %v1602_v44, %v1490_v53  ;;  %v2137_v53 = vand.u32 4294901760, %v2136_v45 }
 0x2e8   :  { %v3114_v8 = vpop.f32.mrf.mxu0 }
 0x2e9   :  { %v1710_v63 = vadd.f32 %v3114_v8, %v1609_v55 }
 0x2ea   :  { %v1702_v51 = vpop.f32.mrf.mxu0  ;;  %v3125_v52 = vpop.f32.mrf.mxu1 }
 0x2eb   :  { %v1795_v60 = vadd.f32 %v3125_v52, %v1696_v54  ;;  %v1703_v3 = vadd.f32 %v1702_v51, %v1603_v59  ;;  %v2146_v51 = vsub.f32 %v3803_v35, %v2145_v42 }
 0x2ec   :  { %v1786_v56 = vpop.f32.mrf.mxu1  ;;  %v3139_v57 = vpop.f32.mrf.mxu0 }
 0x2ed   :  { %v1787_v0 = vadd.f32 %v1786_v56, %v1689_v58  ;;  %v1900_v4 = vadd.f32 %v3139_v57, %v1795_v60  ;;  %v2156_v56 = vsub.f32 %v3809_v39, %v2155_v47  ;;  %v2147_v60 = vand.u32 4294901760, %v2146_v51 }
 0x2ee   :  { %v1893_v61 = vpop.f32.mrf.mxu0 }
 0x2ef   :  { %v3128_v62 = vpop.f32.mrf.mxu1  ;;  %v1894_v10 = vadd.f32 %v1893_v61, %v1787_v0 }
 0x2f0   :  { %v3142_v2 = vpop.f32.mrf.mxu0  ;;  %v1811_v5 = vadd.f32 %v3128_v62, %v1710_v63  ;;  %v2157_v63 = vand.u32 4294901760, %v2156_v56 }
 0x2f1   :  { %v1802_v1 = vpop.f32.mrf.mxu1 }
 0x2f2   :  { %v1803_v11 = vadd.f32 %v1802_v1, %v1703_v3  ;;  %v1905_v13 = vpop.f32.mrf.mxu0  ;;  %v1912_v15 = vadd.f32 %v3142_v2, %v1811_v5 }
 0x2f3   :  { %v3153_v6 = vpop.f32.mrf.mxu1 }
 0x2f4   :  { %v1993_v12 = vadd.f32 %v3153_v6, %v1900_v4  ;;  %v1906_v18 = vadd.f32 %v1905_v13, %v1803_v11  ;;  %v2030_v11 = vpop.permute.xlu1 %2029 }
 0x2f5   :  { %v1986_v14 = vpop.f32.mrf.mxu1 }
 0x2f6   :  { %3264 = vtanh.f32 %v1993_v12  ;;  %v1987_v16 = vadd.f32 %v1986_v14, %v1894_v10  ;;  %v2025_v14 = vpop.permute.xlu0 %2024 }
 0x2f7   :  { %v3156_v17 = vpop.f32.mrf.mxu1 }
 0x2f8   :  { %3266 = vtanh.f32 %v1987_v16  ;;  %v2005_v19 = vadd.f32 %v3156_v17, %v1912_v15 }
 0x2f9   :  { %v1998_v21 = vpop.f32.mrf.mxu1 }
 0x2fa   :  { %3268 = vtanh.f32 %v2005_v19  ;;  %v1999_v22 = vadd.f32 %v1998_v21, %v1906_v18  ;;  %v2040_v19 = vpop.permute.xlu1 %2039  ;;  %v2035_v24 = vpop.permute.xlu0 %2034 }
 0x2fc   :  { %3270 = vtanh.f32 %v1999_v22 }
 0x303   :  { %v3265_v31 = vpop.eup %3264 }
 0x304   :  { %v3800_v34 = vand.u32 4294901760, %v3265_v31 }
 0x305   :  { %v3267_v33 = vpop.eup %3266 }
 0x306   :  { %v3806_v38 = vand.u32 4294901760, %v3267_v33  ;;  %v2203_v43 = vsub.f32 %v3265_v31, %v3800_v34 }
 0x307   :  { %v3269_v37 = vpop.eup %3268 }
 0x308   :  { %v3811_v40 = vand.u32 4294901760, %v3269_v37  ;;  %v2210_v8 = vsub.f32 %v3267_v33, %v3806_v38  ;;  %v2204_v52 = vand.u32 4294901760, %v2203_v43 }
 0x309   :  { %v3271_v41 = vpop.eup %3270 }
 0x30a   :  { %v3815_v44 = vand.u32 4294901760, %v3271_v41  ;;  %3157 = vmatprep.subr.mxu0 %v3811_v40  ;;  %v2189_v46 = vsub.f32 %v3269_v37, %v3811_v40  ;;  %v2211_v57 = vand.u32 4294901760, %v2210_v8  ;;  %v2205_v61 = vsub.f32 %v2203_v43, %v2204_v52 }
 0x30b   :  { %3158 = vmatpush3.msra.mxu0 %v3811_v40 }
 0x30c   :  { %3159 = vmatprep.subr.mxu0 %v3815_v44  ;;  %v2190_v9 = vand.u32 4294901760, %v2189_v46  ;;  %v2196_v50 = vsub.f32 %v3271_v41, %v3815_v44  ;;  %v2212_v0 = vsub.f32 %v2210_v8, %v2211_v57  ;;  %v2206_v1 = vand.u32 4294901760, %v2205_v61 }
 0x30d   :  { %3160 = vmatpush3.msra.mxu0 %v3815_v44 }
 0x30e   :  { %3161 = vmatprep.subr.mxu0 %v3800_v34  ;;  %v2191_v54 = vsub.f32 %v2189_v46, %v2190_v9  ;;  %v2197_v55 = vand.u32 4294901760, %v2196_v50  ;;  %v2213_v2 = vand.u32 4294901760, %v2212_v0 }
 0x30f   :  { %3162 = vmatpush3.msra.mxu0 %v3800_v34 }
 0x310   :  { %3163 = vmatprep.subr.mxu0 %v3806_v38  ;;  %v2192_v58 = vand.u32 4294901760, %v2191_v54  ;;  %v2198_v59 = vsub.f32 %v2196_v50, %v2197_v55 }
 0x311   :  { %3164 = vmatpush3.msra.mxu0 %v3806_v38 }
 0x312   :  { %3166 = vmatmul.mubr.f32.vlgmr.msra.gmra.mxu0 %v2137_v53  ;;  %3171 = vmatprep.subr.mxu1 %v2192_v58  ;;  %v2199_v62 = vand.u32 4294901760, %v2198_v59 }
 0x313   :  { %3185 = vmatprep.subr.mxu0 %v2189_v46  ;;  %3172 = vmatpush3.msra.mxu1 %v2192_v58 }
 0x314   :  { %3186 = vmatpush3.msra.mxu0 %v2189_v46  ;;  %3173 = vmatprep.subr.mxu1 %v2199_v62 }
 0x315   :  { %3187 = vmatprep.subr.mxu0 %v2196_v50  ;;  %3168 = vmatprep.mubr.f32.mxu0 %v2147_v60 }
 0x316   :  { %3174 = vmatpush3.msra.mxu1 %v2199_v62  ;;  %3188 = vmatpush3.msra.mxu0 %v2196_v50 }
 0x317   :  { %3169 = vmatmul.mubr.f32.gmra.mxu0 %v2157_v63  ;;  %3175 = vmatprep.subr.mxu1 %v2206_v1 }
 0x318   :  { %3189 = vmatprep.subr.mxu0 %v2203_v43  ;;  %3176 = vmatpush3.msra.mxu1 %v2206_v1 }
 0x319   :  { %3190 = vmatpush3.msra.mxu0 %v2203_v43  ;;  %3177 = vmatprep.subr.mxu1 %v2213_v2 }
 0x31a   :  { %3191 = vmatprep.subr.mxu0 %v2210_v8  ;;  %3178 = vmatpush3.msra.mxu1 %v2213_v2 }
 0x31b   :  { %3192 = vmatpush3.msra.mxu0 %v2210_v8  ;;  %3180 = vmatmul.mubr.f32.vlgmr.msra.gmra.mxu1 %v3789_v26 }
 0x31c   :  { %3193 = vmatprep.mubr.f32.mxu0 %v3772_v28  ;;  %3199 = vmatprep.subr.mxu1 %v3811_v40 }
 0x31d   :  { %3213 = vmatprep.subr.mxu0 %v2190_v9  ;;  %3194 = vmatmul.mubr.f32.vlgmr.msra.gmra.mxu0 %v3796_v30 }
 0x31e   :  { %3200 = vmatpush3.msra.mxu1 %v3811_v40  ;;  %3214 = vmatpush3.msra.mxu0 %v2190_v9 }
 0x31f   :  { %3201 = vmatprep.subr.mxu1 %v3815_v44  ;;  %3215 = vmatprep.subr.mxu0 %v2197_v55 }
 0x320   :  { %3182 = vmatprep.mubr.f32.mxu1 %v3793_v29  ;;  %3202 = vmatpush3.msra.mxu1 %v3815_v44 }
 0x321   :  { %3216 = vmatpush3.msra.mxu0 %v2197_v55  ;;  %3183 = vmatmul.mubr.f32.gmra.mxu1 %v3798_v32 }
 0x322   :  { %3203 = vmatprep.subr.mxu1 %v3800_v34  ;;  %3217 = vmatprep.subr.mxu0 %v2204_v52 }
 0x323   :  { %3196 = vmatprep.mubr.f32.mxu0 %v3803_v35  ;;  %3204 = vmatpush3.msra.mxu1 %v3800_v34 }
 0x324   :  { %3218 = vmatpush3.msra.mxu0 %v2204_v52  ;;  %3205 = vmatprep.subr.mxu1 %v3806_v38 }
 0x325   :  { %3197 = vmatmul.mubr.f32.gmra.mxu0 %v3809_v39  ;;  %3219 = vmatprep.subr.mxu0 %v2211_v57 }
 0x326   :  { %3206 = vmatpush3.msra.mxu1 %v3806_v38  ;;  %3207 = vmatprep.mubr.f32.mxu1 %v2125_v48 }
 0x327   :  { %3220 = vmatpush3.msra.mxu0 %v2211_v57  ;;  %3208 = vmatmul.mubr.f32.vlgmr.msra.gmra.mxu1 %v2135_v36 }
 0x328   :  { %3227 = vmatprep.subr.mxu1 %v3811_v40  ;;  %3221 = vmatprep.mubr.f32.mxu0 %v3769_v27 }
 0x329   :  { %3228 = vmatpush3.msra.mxu1 %v3811_v40  ;;  %3222 = vmatmul.mubr.f32.vlgmr.msra.gmra.mxu0 %v3789_v26 }
 0x32a   :  { %3229 = vmatprep.subr.mxu1 %v3815_v44  ;;  %3210 = vmatprep.mubr.f32.mxu1 %v2145_v42 }
 0x32b   :  { %3230 = vmatpush3.msra.mxu1 %v3815_v44  ;;  %3224 = vmatprep.mubr.f32.mxu0 %v3793_v29 }
 0x32c   :  { %3211 = vmatmul.mubr.f32.gmra.mxu1 %v2155_v47  ;;  %3231 = vmatprep.subr.mxu1 %v3800_v34 }
 0x32d   :  { %3232 = vmatpush3.msra.mxu1 %v3800_v34  ;;  %3225 = vmatmul.mubr.f32.gmra.mxu0 %v3798_v32 }
 0x32e   :  { %3233 = vmatprep.subr.mxu1 %v3806_v38  ;;  %3235 = vmatprep.mubr.f32.mxu1 %v3769_v27 }
 0x32f   :  { %3234 = vmatpush3.msra.mxu1 %v3806_v38 }
 0x330   :  { %3236 = vmatmul.mubr.f32.vlgmr.msra.gmra.mxu1 %v3789_v26 }
 0x331   :  { %3238 = vmatprep.mubr.f32.mxu1 %v3793_v29 }
 0x334   :  { %3239 = vmatmul.mubr.f32.gmra.mxu1 %v3798_v32 }
 0x3d2   :  { %v3167_v28 = vpop.f32.mrf.mxu0 }
 0x3d3   :  { %v2140_v27 = vadd.f32 %v3167_v28, %v2030_v11 }
 0x3d4   :  { %v2129_v48 = vpop.f32.mrf.mxu0 }
 0x3d5   :  { %v2130_v16 = vadd.f32 %v2129_v48, %v2025_v14 }
 0x3d7   :  { %v3170_v3 = vpop.f32.mrf.mxu0 }
 0x3d8   :  { %v2160_v20 = vadd.f32 %v3170_v3, %v2040_v19 }
 0x3d9   :  { %v2149_v4 = vpop.f32.mrf.mxu0 }
 0x3da   :  { %v2150_v25 = vadd.f32 %v2149_v4, %v2035_v24 }
 0x3db   :  { %v3181_v5 = vpop.f32.mrf.mxu1 }
 0x3dc   :  { %v2257_v17 = vadd.f32 %v3181_v5, %v2140_v27 }
 0x3dd   :  { %v2250_v6 = vpop.f32.mrf.mxu1  ;;  %v3195_v10 = vpop.f32.mrf.mxu0 }
 0x3de   :  { %v2251_v21 = vadd.f32 %v2250_v6, %v2130_v16  ;;  %v2356_v26 = vadd.f32 %v3195_v10, %v2257_v17 }
 0x3df   :  { %v2348_v13 = vpop.f32.mrf.mxu0 }
 0x3e0   :  { %v2349_v30 = vadd.f32 %v2348_v13, %v2251_v21 }
 0x3e1   :  { %v3184_v12 = vpop.f32.mrf.mxu1 }
 0x3e2   :  { %v2269_v49 = vadd.f32 %v3184_v12, %v2160_v20 }
 0x3e3   :  { %v2262_v15 = vpop.f32.mrf.mxu1 }
 0x3e4   :  { %v2263_v31 = vadd.f32 %v2262_v15, %v2150_v25 }
 0x3e5   :  { %v3198_v18 = vpop.f32.mrf.mxu0 }
 0x3e6   :  { %v2370_v35 = vadd.f32 %v3198_v18, %v2269_v49 }
 0x3e7   :  { %v2362_v22 = vpop.f32.mrf.mxu0  ;;  %v3209_v23 = vpop.f32.mrf.mxu1 }
 0x3e8   :  { %v2455_v32 = vadd.f32 %v3209_v23, %v2356_v26  ;;  %v2363_v39 = vadd.f32 %v2362_v22, %v2263_v31 }
 0x3e9   :  { %v2446_v7 = vpop.f32.mrf.mxu1  ;;  %v3223_v29 = vpop.f32.mrf.mxu0 }
 0x3ea   :  { %v2447_v36 = vadd.f32 %v2446_v7, %v2349_v30  ;;  %v2560_v40 = vadd.f32 %v3223_v29, %v2455_v32 }
 0x3eb   :  { %v2553_v33 = vpop.f32.mrf.mxu0 }
 0x3ec   :  { %v3212_v34 = vpop.f32.mrf.mxu1  ;;  %v2554_v43 = vadd.f32 %v2553_v33, %v2447_v36 }
 0x3ed   :  { %v3226_v38 = vpop.f32.mrf.mxu0  ;;  %v2471_v41 = vadd.f32 %v3212_v34, %v2370_v35 }
 0x3ee   :  { %v2462_v37 = vpop.f32.mrf.mxu1 }
 0x3ef   :  { %v2463_v44 = vadd.f32 %v2462_v37, %v2363_v39  ;;  %v2565_v46 = vpop.f32.mrf.mxu0  ;;  %v2572_v8 = vadd.f32 %v3226_v38, %v2471_v41 }
 0x3f0   :  { %v3237_v42 = vpop.f32.mrf.mxu1 }
 0x3f1   :  { %v2653_v45 = vadd.f32 %v3237_v42, %v2560_v40  ;;  %v2566_v51 = vadd.f32 %v2565_v46, %v2463_v44 }
 0x3f2   :  { %v2646_v47 = vpop.f32.mrf.mxu1 }
 0x3f3   :  { %2669 = vst [vmem:[#allocation5 + $0x8] sm:$0xff] %v2653_v45  ;;  %v2647_v9 = vadd.f32 %v2646_v47, %v2554_v43 }
 0x3f4   :  { %v3240_v50 = vpop.f32.mrf.mxu1 }
 0x3f5   :  { %2668 = vst [vmem:[#allocation5] sm:$0xff] %v2647_v9  ;;  %v2665_v52 = vadd.f32 %v3240_v50, %v2572_v8 }
 0x3f6   :  { %v2658_v53 = vpop.f32.mrf.mxu1 }
 0x3f7   :  { %2671 = vst [vmem:[#allocation5 + $0x18] sm:$0xff] %v2665_v52  ;;  %v2659_v54 = vadd.f32 %v2658_v53, %v2566_v51 }
 0x3f9   :  { %2670 = vst [vmem:[#allocation5 + $0x10] sm:$0xff] %v2659_v54 }
 0x3fa   :  { %3303 = shalt.err (!%p3300_p9)
}
 0x3fb   :  { %2683 = dma.vmem_to_hbm [thread:$0]  %s2678_s29, 512, %s3886_s3, [#allocation4], %s3317_s15, %s3317_s15, %s3318_s16  }
 0x3fc   :  { %3314 = dma.done.wait [#allocation4], 512  }
 0x3fd   :  { %3315 = vsyncadd [#allocation4], 4294966784 }
 0x3fe   :  { %2687 = vsyncpa [#allocation3], 1 }
 0x3ff   :  { %2688 = vsyncpa [#allocation4], 1 }

// kernel: tpu_custom_call.1
= control target key start
LH: loop header
LB: loop body
LE: loop exit
PB: predicated region body
PF: predicated region fallthrough
CT: control target
= control target key end

     0   :  { %8 = vsyncpa [#allocation3], 0  ;;  %s3883_s0 = inlined_call_operand.hbm [shape: f32[32,128], index: 0, kind: input, shape index: {}]   ;;  %s3884_s1 = inlined_call_operand.vmem [shape: f32[4,32,32], index: 1, kind: input, shape index: {}]   ;;  %s3885_s2 = inlined_call_operand.vmem [shape: f32[4,32,1], index: 2, kind: input, shape index: {}]   ;;  %s3886_s3 = inlined_call_operand.hbm [shape: f32[32,128], index: 3, kind: output, shape index: {}]  }
   0x1   :  { %9 = vsyncpa [#allocation4], 0  ;;  %s3316_s12 = smov [#allocation2]  }
   0x2   :  { %s15_s13 = sshll.u32 %s3316_s12, 4  ;;  %s16_s13 = int_to_ptr.vmem [resolvable:$true] %s15_s13 }
   0x3   :  { %s3280_s14 = scalar_lea.vmem %s16_s13, 512  ;;  %p3285_p1 = scmp.lt.s32.totalorder %s16_s13, %s16_s13 }
   0x4   :  { %p3281_p0 = scmp.ne.s32.totalorder %s16_s13, %s3280_s14  ;;  %p3286_p2 = scmp.lt.s32.totalorder %s3280_s14, %s3280_s14 }
   0x6   :  { %p3287_p3 = por %p3286_p2, %p3285_p1 }
   0x8   :  { %p3288_p4 = pnand %p3287_p3, %p3281_p0 }
   0xa   :  { %3291 = shalt.err (!%p3288_p4)
}
   0xb   :  { %s3317_s15 = smov 128   ;;  %s3318_s16 = smov 8  }
   0xc   :  { %21 = dma.hbm_to_vmem [thread:$0]  %s3883_s0, 512, %s16_s13, [#allocation3], %s3317_s15, %s3317_s15, %s3318_s16  }
   0xd   :  { %3312 = dma.done.wait [#allocation3], 512  }
   0xe   :  { %3313 = vsyncadd [#allocation3], 4294966784  ;;  %v3319_v0 = vmov 0   ;;  %vm61_vm0 = vcmask 261120   ;;  %v32_v1 = vld [vmem:[#allocation2 + $0x18] sm:$0xff]  ;;  %v31_v2 = vld [vmem:[#allocation2 + $0x10] sm:$0xff] }
   0xf   :  { %3246 = vset.pattern.permute.xlu0 %v3319_v0  ;;  %3247 = vset.pattern.permute.xlu1 %v3319_v0  ;;  %v30_v3 = vld [vmem:[#allocation2 + $0x8] sm:$0xff]  ;;  %v3347_v4 = vand.u32 4294901760, %v32_v1  ;;  %v3349_v5 = vand.u32 4294901760, %v31_v2  ;;  %v29_v7 = vld [vmem:[#allocation2] sm:$0xff]  ;;  %v35_v13 = vld [vmem:[%s3884_s1 + $0x10] sm:$0xff] }
  0x10   :  { %v3351_v6 = vand.u32 4294901760, %v30_v3  ;;  %v33_v8 = vld [vmem:[%s3884_s1] sm:$0xff]  ;;  %v34_v9 = vld [vmem:[%s3884_s1 + $0x8] sm:$0xff]  ;;  %v3359_v10 = vand.u32 4294901760, %v29_v7  ;;  %v36_v14 = vld [vmem:[%s3884_s1 + $0x18] sm:$0xff]  ;;  %v69_v22 = vsel %vm61_vm0, %v35_v13, 0 }
  0x11   :  { %v63_v11 = vsel %vm61_vm0, %v33_v8, 0  ;;  %v66_v12 = vsel %vm61_vm0, %v34_v9, 0  ;;  %v40_v15 = vld [vmem:[%s3885_s2 + $0x18] sm:$0xff]  ;;  %2905 = vmatprep.subr.mxu0 %v3347_v4  ;;  %v209_v16 = vsub.f32 %v32_v1, %v3347_v4  ;;  %v3379_v19 = vsub.f32 %v31_v2, %v3349_v5  ;;  %v38_v20 = vld [vmem:[%s3885_s2 + $0x8] sm:$0xff]  ;;  %v39_v25 = vld [vmem:[%s3885_s2 + $0x10] sm:$0xff] }
  0x12   :  { %v3374_v17 = vand.u32 4294901760, %v63_v11  ;;  %v3376_v18 = vand.u32 4294901760, %v66_v12  ;;  %58 = vperm.xlu0 %3246, %v40_v15   ;;  %2906 = vmatpush3.msra.mxu0 %v3347_v4  ;;  %v3386_v21 = vsub.f32 %v30_v3, %v3351_v6  ;;  %v72_v23 = vsel %vm61_vm0, %v36_v14, 0  ;;  %v37_v34 = vld [vmem:[%s3885_s2] sm:$0xff]  ;;  %v2696_v46 = vld [vmem:[%s3885_s2 + $0x38] sm:$0xff]  ;;  %v2694_v58 = vld [vmem:[%s3885_s2 + $0x28] sm:$0xff] }
  0x13   :  { %v3391_v24 = vsub.f32 %v29_v7, %v3359_v10  ;;  %48 = vperm.xlu1 %3247, %v38_v20   ;;  %2907 = vmatprep.subr.mxu0 %v3349_v5  ;;  %v3397_v26 = vand.u32 4294901760, %v209_v16  ;;  %v3406_v29 = vand.u32 4294901760, %v3379_v19  ;;  %v3413_v31 = vand.u32 4294901760, %v69_v22  ;;  %v2695_v59 = vld [vmem:[%s3885_s2 + $0x30] sm:$0xff]  ;;  %v2704_v60 = vld [vmem:[%s3885_s2 + $0x58] sm:$0xff]  ;;  %v2693_v61 = vld [vmem:[%s3885_s2 + $0x20] sm:$0xff] }
  0x14   :  { %v3400_v27 = vsub.f32 %v63_v11, %v3374_v17  ;;  %v3403_v28 = vsub.f32 %v66_v12, %v3376_v18  ;;  %2927 = vmatprep.mubr.f32.mxu1 %v3374_v17  ;;  %2908 = vmatpush3.msra.mxu0 %v3349_v5  ;;  %v3411_v30 = vand.u32 4294901760, %v3386_v21  ;;  %v3415_v32 = vand.u32 4294901760, %v72_v23  ;;  %v2702_v62 = vld [vmem:[%s3885_s2 + $0x48] sm:$0xff]  ;;  %v2703_v63 = vld [vmem:[%s3885_s2 + $0x50] sm:$0xff]  ;;  %v2709_v0 = vld [vmem:[%s3885_s2 + $0x60] sm:$0xff] }
  0x15   :  { %v3418_v33 = vand.u32 4294901760, %v3391_v24  ;;  %2909 = vmatprep.subr.mxu0 %v3351_v6  ;;  %v211_v35 = vsub.f32 %v209_v16, %v3397_v26  ;;  %v218_v38 = vsub.f32 %v3379_v19, %v3406_v29  ;;  %v3433_v40 = vsub.f32 %v69_v22, %v3413_v31  ;;  %v2701_v1 = vld [vmem:[%s3885_s2 + $0x40] sm:$0xff]  ;;  %v2711_v2 = vld [vmem:[%s3885_s2 + $0x70] sm:$0xff]  ;;  %v2710_v3 = vld [vmem:[%s3885_s2 + $0x68] sm:$0xff] }
  0x16   :  { %v145_v36 = vand.u32 4294901760, %v3400_v27  ;;  %v155_v37 = vand.u32 4294901760, %v3403_v28  ;;  %53 = vperm.xlu0 %3246, %v39_v25   ;;  %2910 = vmatpush3.msra.mxu0 %v3351_v6  ;;  %v225_v39 = vsub.f32 %v3386_v21, %v3411_v30  ;;  %v3436_v41 = vsub.f32 %v72_v23, %v3415_v32 }
  0x17   :  { %2911 = vmatprep.subr.mxu0 %v3359_v10  ;;  %v212_v42 = vand.u32 4294901760, %v211_v35  ;;  %v219_v45 = vand.u32 4294901760, %v218_v38  ;;  %43 = vperm.xlu1 %3247, %v37_v34   ;;  %v165_v47 = vand.u32 4294901760, %v3433_v40  ;;  %v232_v49 = vsub.f32 %v3391_v24, %v3418_v33 }
  0x18   :  { %v146_v43 = vsub.f32 %v3400_v27, %v145_v36  ;;  %v156_v44 = vsub.f32 %v3403_v28, %v155_v37  ;;  %2912 = vmatpush3.msra.mxu0 %v3359_v10  ;;  %v175_v48 = vand.u32 4294901760, %v3436_v41  ;;  %v226_v52 = vand.u32 4294901760, %v225_v39 }
  0x19   :  { %2919 = vmatprep.subr.mxu1 %v212_v42  ;;  %2933 = vmatprep.subr.mxu0 %v209_v16  ;;  %v166_v53 = vsub.f32 %v3433_v40, %v165_v47  ;;  %v233_v57 = vand.u32 4294901760, %v232_v49 }
  0x1a   :  { %v147_v50 = vand.u32 4294901760, %v146_v43  ;;  %v157_v51 = vand.u32 4294901760, %v156_v44  ;;  %2920 = vmatpush3.msra.mxu1 %v212_v42  ;;  %v176_v54 = vsub.f32 %v3436_v41, %v175_v48  ;;  %719 = vperm.xlu0 %3246, %v2696_v46  }
  0x1b   :  { %2921 = vmatprep.subr.mxu1 %v219_v45  ;;  %v167_v55 = vand.u32 4294901760, %v166_v53  ;;  %714 = vperm.xlu1 %3247, %v2695_v59  }
  0x1c   :  { %2913 = vmatprep.mubr.f32.mxu0 %v147_v50  ;;  %2922 = vmatpush3.msra.mxu1 %v219_v45  ;;  %v177_v56 = vand.u32 4294901760, %v176_v54 }
  0x1d   :  { %2914 = vmatmul.mubr.f32.vlgmr.msra.gmra.mxu0 %v157_v51  ;;  %2923 = vmatprep.subr.mxu1 %v226_v52 }
  0x1e   :  { %2934 = vmatpush3.msra.mxu0 %v209_v16  ;;  %2916 = vmatprep.mubr.f32.mxu0 %v167_v55 }
  0x1f   :  { %2935 = vmatprep.subr.mxu0 %v3379_v19  ;;  %2924 = vmatpush3.msra.mxu1 %v226_v52 }
  0x20   :  { %2936 = vmatpush3.msra.mxu0 %v3379_v19  ;;  %2925 = vmatprep.subr.mxu1 %v233_v57 }
  0x21   :  { %2917 = vmatmul.mubr.f32.gmra.mxu0 %v177_v56  ;;  %2937 = vmatprep.subr.mxu0 %v3386_v21 }
  0x22   :  { %2926 = vmatpush3.msra.mxu1 %v233_v57  ;;  %2938 = vmatpush3.msra.mxu0 %v3386_v21 }
  0x23   :  { %2928 = vmatmul.mubr.f32.vlgmr.msra.gmra.mxu1 %v3376_v18  ;;  %2939 = vmatprep.subr.mxu0 %v3391_v24 }
  0x24   :  { %2947 = vmatprep.subr.mxu1 %v3347_v4  ;;  %2940 = vmatpush3.msra.mxu0 %v3391_v24 }
  0x25   :  { %2941 = vmatprep.mubr.f32.mxu0 %v3400_v27  ;;  %2948 = vmatpush3.msra.mxu1 %v3347_v4 }
  0x26   :  { %2942 = vmatmul.mubr.f32.vlgmr.msra.gmra.mxu0 %v3403_v28  ;;  %2949 = vmatprep.subr.mxu1 %v3349_v5 }
  0x27   :  { %2961 = vmatprep.subr.mxu0 %v3397_v26  ;;  %2930 = vmatprep.mubr.f32.mxu1 %v3413_v31 }
  0x28   :  { %2950 = vmatpush3.msra.mxu1 %v3349_v5  ;;  %2962 = vmatpush3.msra.mxu0 %v3397_v26 }
  0x29   :  { %2931 = vmatmul.mubr.f32.gmra.mxu1 %v3415_v32  ;;  %2951 = vmatprep.subr.mxu1 %v3351_v6 }
  0x2a   :  { %2963 = vmatprep.subr.mxu0 %v3406_v29  ;;  %2944 = vmatprep.mubr.f32.mxu0 %v3433_v40 }
  0x2b   :  { %2952 = vmatpush3.msra.mxu1 %v3351_v6  ;;  %2964 = vmatpush3.msra.mxu0 %v3406_v29 }
  0x2c   :  { %2953 = vmatprep.subr.mxu1 %v3359_v10  ;;  %2945 = vmatmul.mubr.f32.gmra.mxu0 %v3436_v41 }
  0x2d   :  { %2965 = vmatprep.subr.mxu0 %v3411_v30  ;;  %2954 = vmatpush3.msra.mxu1 %v3359_v10 }
  0x2e   :  { %2955 = vmatprep.mubr.f32.mxu1 %v145_v36  ;;  %2966 = vmatpush3.msra.mxu0 %v3411_v30 }
  0x2f   :  { %2956 = vmatmul.mubr.f32.vlgmr.msra.gmra.mxu1 %v155_v37  ;;  %2967 = vmatprep.subr.mxu0 %v3418_v33 }
  0x30   :  { %2975 = vmatprep.subr.mxu1 %v3347_v4  ;;  %2968 = vmatpush3.msra.mxu0 %v3418_v33 }
  0x31   :  { %2969 = vmatprep.mubr.f32.mxu0 %v3374_v17  ;;  %2976 = vmatpush3.msra.mxu1 %v3347_v4  ;;  %v2712_v4 = vld [vmem:[%s3885_s2 + $0x78] sm:$0xff] }
  0x32   :  { %2970 = vmatmul.mubr.f32.vlgmr.msra.gmra.mxu0 %v3376_v18  ;;  %2977 = vmatprep.subr.mxu1 %v3349_v5 }
  0x33   :  { %2958 = vmatprep.mubr.f32.mxu1 %v165_v47  ;;  %2978 = vmatpush3.msra.mxu1 %v3349_v5  ;;  %v2689_v5 = vld [vmem:[%s3884_s1 + $0x20] sm:$0xff] }
  0x34   :  { %2972 = vmatprep.mubr.f32.mxu0 %v3413_v31  ;;  %2959 = vmatmul.mubr.f32.gmra.mxu1 %v175_v48 }
  0x35   :  { %2979 = vmatprep.subr.mxu1 %v3351_v6  ;;  %2983 = vmatprep.mubr.f32.mxu1 %v3374_v17 }
  0x36   :  { %2980 = vmatpush3.msra.mxu1 %v3351_v6  ;;  %2973 = vmatmul.mubr.f32.gmra.mxu0 %v3415_v32  ;;  %v723_v6 = vsel %vm61_vm0, %v2689_v5, 0 }
  0x37   :  { %2981 = vmatprep.subr.mxu1 %v3359_v10  ;;  %709 = vperm.xlu0 %3246, %v2694_v58   ;;  %v3545_v7 = vand.u32 4294901760, %v723_v6 }
  0x38   :  { %2982 = vmatpush3.msra.mxu1 %v3359_v10  ;;  %704 = vperm.xlu1 %3247, %v2693_v61  }
  0x39   :  { %2984 = vmatmul.mubr.f32.vlgmr.msra.gmra.mxu1 %v3376_v18  ;;  %v3548_v8 = vsub.f32 %v723_v6, %v3545_v7 }
  0x3a   :  { %2986 = vmatprep.mubr.f32.mxu1 %v3413_v31 }
  0x3b   :  { %1379 = vperm.xlu0 %3246, %v2704_v60   ;;  %v805_v9 = vand.u32 4294901760, %v3548_v8 }
  0x3c   :  { %1374 = vperm.xlu1 %3247, %v2703_v63  }
  0x3d   :  { %2987 = vmatmul.mubr.f32.gmra.mxu1 %v3415_v32  ;;  %v806_v10 = vsub.f32 %v3548_v8, %v805_v9 }
  0x3e   :  { %3011 = vmatprep.mubr.f32.mxu1 %v3545_v7 }
  0x3f   :  { %1369 = vperm.xlu0 %3246, %v2702_v62   ;;  %v807_v11 = vand.u32 4294901760, %v806_v10  ;;  %v2690_v62 = vld [vmem:[%s3884_s1 + $0x28] sm:$0xff] }
  0x40   :  { %1364 = vperm.xlu1 %3247, %v2701_v1   ;;  %v726_v1 = vsel %vm61_vm0, %v2690_v62, 0 }
  0x41   :  { %2997 = vmatprep.mubr.f32.mxu0 %v807_v11 }
  0x43   :  { %2024 = vperm.xlu0 %3246, %v2709_v0  }
  0x44   :  { %2029 = vperm.xlu1 %3247, %v2710_v3   ;;  %v2692_v3 = vld [vmem:[%s3884_s1 + $0x38] sm:$0xff] }
  0x45   :  { %v732_v6 = vsel %vm61_vm0, %v2692_v3, 0 }
  0x47   :  { %2034 = vperm.xlu0 %3246, %v2711_v2   ;;  %v2691_v2 = vld [vmem:[%s3884_s1 + $0x30] sm:$0xff] }
  0x48   :  { %2039 = vperm.xlu1 %3247, %v2712_v4   ;;  %v3565_v4 = vand.u32 4294901760, %v726_v1  ;;  %v729_v5 = vsel %vm61_vm0, %v2691_v2, 0 }
  0x49   :  { %v3569_v10 = vand.u32 4294901760, %v729_v5 }
  0x4a   :  { %v3572_v11 = vsub.f32 %v726_v1, %v3565_v4 }
  0x8d   :  { %v59_v23 = vpop.permute.xlu0 %58 }
  0x8e   :  { %v49_v19 = vpop.permute.xlu1 %48 }
  0x91   :  { %v54_v33 = vpop.permute.xlu0 %53 }
  0x92   :  { %v44_v25 = vpop.permute.xlu1 %43 }
  0xdd   :  { %v2915_v12 = vpop.f32.mrf.mxu0 }
  0xde   :  { %v160_v22 = vadd.f32 %v2915_v12, %v49_v19 }
  0xdf   :  { %v149_v13 = vpop.f32.mrf.mxu0 }
  0xe0   :  { %v150_v27 = vadd.f32 %v149_v13, %v44_v25  ;;  %v3574_v13 = vand.u32 4294901760, %v732_v6 }
  0xe1   :  { %v2918_v14 = vpop.f32.mrf.mxu0 }
  0xe2   :  { %v180_v28 = vadd.f32 %v2918_v14, %v59_v23 }
  0xe3   :  { %v169_v15 = vpop.f32.mrf.mxu0  ;;  %v2929_v16 = vpop.f32.mrf.mxu1 }
  0xe4   :  { %v277_v29 = vadd.f32 %v2929_v16, %v160_v22  ;;  %v170_v35 = vadd.f32 %v169_v15, %v54_v33  ;;  %v3579_v16 = vsub.f32 %v729_v5, %v3569_v10 }
  0xe5   :  { %v270_v17 = vpop.f32.mrf.mxu1 }
  0xe6   :  { %v2943_v18 = vpop.f32.mrf.mxu0  ;;  %v271_v32 = vadd.f32 %v270_v17, %v150_v27  ;;  %v815_v17 = vand.u32 4294901760, %v3572_v11  ;;  %v825_v23 = vand.u32 4294901760, %v3579_v16 }
  0xe7   :  { %v376_v36 = vadd.f32 %v2943_v18, %v277_v29 }
  0xe8   :  { %v368_v21 = vpop.f32.mrf.mxu0 }
  0xe9   :  { %v2932_v20 = vpop.f32.mrf.mxu1  ;;  %v369_v39 = vadd.f32 %v368_v21, %v271_v32  ;;  %v826_v32 = vsub.f32 %v3579_v16, %v825_v23 }
  0xea   :  { %v289_v37 = vadd.f32 %v2932_v20, %v180_v28  ;;  %v3585_v20 = vsub.f32 %v732_v6, %v3574_v13 }
  0xeb   :  { %v282_v24 = vpop.f32.mrf.mxu1 }
  0xec   :  { %v2946_v26 = vpop.f32.mrf.mxu0  ;;  %v283_v40 = vadd.f32 %v282_v24, %v170_v35  ;;  %v835_v28 = vand.u32 4294901760, %v3585_v20 }
  0xed   :  { %v390_v44 = vadd.f32 %v2946_v26, %v289_v37  ;;  %v816_v26 = vsub.f32 %v3572_v11, %v815_v17 }
  0xee   :  { %v382_v30 = vpop.f32.mrf.mxu0  ;;  %v836_v37 = vsub.f32 %v3585_v20, %v835_v28 }
  0xef   :  { %v2957_v31 = vpop.f32.mrf.mxu1  ;;  %v383_v48 = vadd.f32 %v382_v30, %v283_v40 }
  0xf0   :  { %v475_v41 = vadd.f32 %v2957_v31, %v376_v36 }
  0xf1   :  { %v466_v34 = vpop.f32.mrf.mxu1 }
  0xf2   :  { %v2971_v38 = vpop.f32.mrf.mxu0  ;;  %v467_v45 = vadd.f32 %v466_v34, %v369_v39  ;;  %v817_v34 = vand.u32 4294901760, %v816_v26 }
  0xf3   :  { %v580_v49 = vadd.f32 %v2971_v38, %v475_v41  ;;  %v827_v41 = vand.u32 4294901760, %v826_v32 }
  0xf4   :  { %v573_v42 = vpop.f32.mrf.mxu0  ;;  %v2960_v43 = vpop.f32.mrf.mxu1 }
  0xf5   :  { %v491_v50 = vadd.f32 %v2960_v43, %v390_v44  ;;  %v574_v52 = vadd.f32 %v573_v42, %v467_v45  ;;  %v837_v44 = vand.u32 4294901760, %v836_v37 }
  0xf6   :  { %v482_v46 = vpop.f32.mrf.mxu1  ;;  %v2974_v47 = vpop.f32.mrf.mxu0 }
  0xf7   :  { %v483_v53 = vadd.f32 %v482_v46, %v383_v48  ;;  %v592_v57 = vadd.f32 %v2974_v47, %v491_v50 }
  0xf8   :  { %v585_v55 = vpop.f32.mrf.mxu0 }
  0xf9   :  { %v2985_v51 = vpop.f32.mrf.mxu1  ;;  %v586_v60 = vadd.f32 %v585_v55, %v483_v53 }
  0xfa   :  { %v673_v54 = vadd.f32 %v2985_v51, %v580_v49 }
  0xfb   :  { %v666_v56 = vpop.f32.mrf.mxu1 }
  0xfc   :  { %3248 = vtanh.f32 %v673_v54  ;;  %v667_v58 = vadd.f32 %v666_v56, %v574_v52 }
  0xfd   :  { %v2988_v59 = vpop.f32.mrf.mxu1 }
  0xfe   :  { %3250 = vtanh.f32 %v667_v58  ;;  %v685_v61 = vadd.f32 %v2988_v59, %v592_v57  ;;  %v720_v57 = vpop.permute.xlu0 %719 }
  0xff   :  { %v678_v63 = vpop.f32.mrf.mxu1 }
 0x100   :  { %3252 = vtanh.f32 %v685_v61  ;;  %v679_v0 = vadd.f32 %v678_v63, %v586_v60  ;;  %v715_v60 = vpop.permute.xlu1 %714 }
 0x102   :  { %3254 = vtanh.f32 %v679_v0  ;;  %v710_v63 = vpop.permute.xlu0 %709 }
 0x104   :  { %v705_v2 = vpop.permute.xlu1 %704 }
 0x109   :  { %v3249_v12 = vpop.eup %3248 }
 0x10a   :  { %v3576_v15 = vand.u32 4294901760, %v3249_v12 }
 0x10b   :  { %v3251_v14 = vpop.eup %3250 }
 0x10c   :  { %v3582_v19 = vand.u32 4294901760, %v3251_v14  ;;  %v883_v24 = vsub.f32 %v3249_v12, %v3576_v15 }
 0x10d   :  { %v3253_v18 = vpop.eup %3252 }
 0x10e   :  { %v3587_v21 = vand.u32 4294901760, %v3253_v18  ;;  %v890_v29 = vsub.f32 %v3251_v14, %v3582_v19  ;;  %v884_v33 = vand.u32 4294901760, %v883_v24 }
 0x10f   :  { %v3255_v22 = vpop.eup %3254 }
 0x110   :  { %v3591_v25 = vand.u32 4294901760, %v3255_v22  ;;  %2989 = vmatprep.subr.mxu0 %v3587_v21  ;;  %v869_v27 = vsub.f32 %v3253_v18, %v3587_v21  ;;  %v891_v38 = vand.u32 4294901760, %v890_v29  ;;  %v885_v42 = vsub.f32 %v883_v24, %v884_v33 }
 0x111   :  { %2990 = vmatpush3.msra.mxu0 %v3587_v21 }
 0x112   :  { %2991 = vmatprep.subr.mxu0 %v3591_v25  ;;  %v870_v30 = vand.u32 4294901760, %v869_v27  ;;  %v876_v31 = vsub.f32 %v3255_v22, %v3591_v25  ;;  %v892_v45 = vsub.f32 %v890_v29, %v891_v38  ;;  %v886_v46 = vand.u32 4294901760, %v885_v42 }
 0x113   :  { %2992 = vmatpush3.msra.mxu0 %v3591_v25 }
 0x114   :  { %2993 = vmatprep.subr.mxu0 %v3576_v15  ;;  %v871_v35 = vsub.f32 %v869_v27, %v870_v30  ;;  %v877_v36 = vand.u32 4294901760, %v876_v31  ;;  %v893_v47 = vand.u32 4294901760, %v892_v45  ;;  %v2699_v45 = vld [vmem:[%s3884_s1 + $0x50] sm:$0xff] }
 0x115   :  { %2994 = vmatpush3.msra.mxu0 %v3576_v15 }
 0x116   :  { %2995 = vmatprep.subr.mxu0 %v3582_v19  ;;  %v872_v39 = vand.u32 4294901760, %v871_v35  ;;  %v878_v40 = vsub.f32 %v876_v31, %v877_v36 }
 0x117   :  { %2996 = vmatpush3.msra.mxu0 %v3582_v19 }
 0x118   :  { %2998 = vmatmul.mubr.f32.vlgmr.msra.gmra.mxu0 %v817_v34  ;;  %3003 = vmatprep.subr.mxu1 %v872_v39  ;;  %v879_v43 = vand.u32 4294901760, %v878_v40 }
 0x119   :  { %3017 = vmatprep.subr.mxu0 %v869_v27  ;;  %3004 = vmatpush3.msra.mxu1 %v872_v39 }
 0x11a   :  { %3018 = vmatpush3.msra.mxu0 %v869_v27  ;;  %3005 = vmatprep.subr.mxu1 %v879_v43 }
 0x11b   :  { %3019 = vmatprep.subr.mxu0 %v876_v31  ;;  %3000 = vmatprep.mubr.f32.mxu0 %v827_v41  ;;  %v2698_v41 = vld [vmem:[%s3884_s1 + $0x48] sm:$0xff] }
 0x11c   :  { %3006 = vmatpush3.msra.mxu1 %v879_v43  ;;  %3020 = vmatpush3.msra.mxu0 %v876_v31 }
 0x11d   :  { %3001 = vmatmul.mubr.f32.gmra.mxu0 %v837_v44  ;;  %3007 = vmatprep.subr.mxu1 %v886_v46  ;;  %v1386_v44 = vsel %vm61_vm0, %v2698_v41, 0 }
 0x11e   :  { %3021 = vmatprep.subr.mxu0 %v883_v24  ;;  %3008 = vmatpush3.msra.mxu1 %v886_v46  ;;  %v2700_v46 = vld [vmem:[%s3884_s1 + $0x58] sm:$0xff] }
 0x11f   :  { %3022 = vmatpush3.msra.mxu0 %v883_v24  ;;  %3009 = vmatprep.subr.mxu1 %v893_v47 }
 0x120   :  { %3023 = vmatprep.subr.mxu0 %v890_v29  ;;  %3010 = vmatpush3.msra.mxu1 %v893_v47  ;;  %v3677_v47 = vand.u32 4294901760, %v1386_v44 }
 0x121   :  { %3024 = vmatpush3.msra.mxu0 %v890_v29  ;;  %3012 = vmatmul.mubr.f32.vlgmr.msra.gmra.mxu1 %v3565_v4 }
 0x122   :  { %3025 = vmatprep.mubr.f32.mxu0 %v3548_v8  ;;  %3031 = vmatprep.subr.mxu1 %v3587_v21  ;;  %v2697_v8 = vld [vmem:[%s3884_s1 + $0x40] sm:$0xff] }
 0x123   :  { %3045 = vmatprep.subr.mxu0 %v870_v30  ;;  %3026 = vmatmul.mubr.f32.vlgmr.msra.gmra.mxu0 %v3572_v11 }
 0x124   :  { %3032 = vmatpush3.msra.mxu1 %v3587_v21  ;;  %3046 = vmatpush3.msra.mxu0 %v870_v30 }
 0x125   :  { %3033 = vmatprep.subr.mxu1 %v3591_v25  ;;  %3047 = vmatprep.subr.mxu0 %v877_v36 }
 0x126   :  { %3014 = vmatprep.mubr.f32.mxu1 %v3569_v10  ;;  %3034 = vmatpush3.msra.mxu1 %v3591_v25 }
 0x127   :  { %3048 = vmatpush3.msra.mxu0 %v877_v36  ;;  %3015 = vmatmul.mubr.f32.gmra.mxu1 %v3574_v13 }
 0x128   :  { %3035 = vmatprep.subr.mxu1 %v3576_v15  ;;  %3049 = vmatprep.subr.mxu0 %v884_v33 }
 0x129   :  { %3028 = vmatprep.mubr.f32.mxu0 %v3579_v16  ;;  %3036 = vmatpush3.msra.mxu1 %v3576_v15 }
 0x12a   :  { %3050 = vmatpush3.msra.mxu0 %v884_v33  ;;  %3037 = vmatprep.subr.mxu1 %v3582_v19 }
 0x12b   :  { %3029 = vmatmul.mubr.f32.gmra.mxu0 %v3585_v20  ;;  %3051 = vmatprep.subr.mxu0 %v891_v38 }
 0x12c   :  { %3038 = vmatpush3.msra.mxu1 %v3582_v19  ;;  %3039 = vmatprep.mubr.f32.mxu1 %v805_v9  ;;  %v1383_v9 = vsel %vm61_vm0, %v2697_v8, 0  ;;  %v1389_v8 = vsel %vm61_vm0, %v2699_v45, 0 }
 0x12d   :  { %3052 = vmatpush3.msra.mxu0 %v891_v38  ;;  %3040 = vmatmul.mubr.f32.vlgmr.msra.gmra.mxu1 %v815_v17  ;;  %v3657_v48 = vand.u32 4294901760, %v1383_v9 }
 0x12e   :  { %3059 = vmatprep.subr.mxu1 %v3587_v21  ;;  %3053 = vmatprep.mubr.f32.mxu0 %v3545_v7 }
 0x12f   :  { %3060 = vmatpush3.msra.mxu1 %v3587_v21  ;;  %3054 = vmatmul.mubr.f32.vlgmr.msra.gmra.mxu0 %v3565_v4  ;;  %v3660_v49 = vsub.f32 %v1383_v9, %v3657_v48  ;;  %v1392_v9 = vsel %vm61_vm0, %v2700_v46, 0 }
 0x130   :  { %3061 = vmatprep.subr.mxu1 %v3591_v25  ;;  %3042 = vmatprep.mubr.f32.mxu1 %v825_v23 }
 0x131   :  { %3062 = vmatpush3.msra.mxu1 %v3591_v25  ;;  %3056 = vmatprep.mubr.f32.mxu0 %v3569_v10 }
 0x132   :  { %3043 = vmatmul.mubr.f32.gmra.mxu1 %v835_v28  ;;  %3063 = vmatprep.subr.mxu1 %v3576_v15 }
 0x133   :  { %3064 = vmatpush3.msra.mxu1 %v3576_v15  ;;  %3057 = vmatmul.mubr.f32.gmra.mxu0 %v3574_v13 }
 0x134   :  { %3065 = vmatprep.subr.mxu1 %v3582_v19  ;;  %3067 = vmatprep.mubr.f32.mxu1 %v3545_v7  ;;  %v1465_v7 = vand.u32 4294901760, %v3660_v49 }
 0x135   :  { %3066 = vmatpush3.msra.mxu1 %v3582_v19 }
 0x136   :  { %3068 = vmatmul.mubr.f32.vlgmr.msra.gmra.mxu1 %v3565_v4  ;;  %v1466_v50 = vsub.f32 %v3660_v49, %v1465_v7 }
 0x137   :  { %3070 = vmatprep.mubr.f32.mxu1 %v3569_v10 }
 0x138   :  { %v1467_v51 = vand.u32 4294901760, %v1466_v50  ;;  %v3681_v50 = vand.u32 4294901760, %v1389_v8 }
 0x13a   :  { %3071 = vmatmul.mubr.f32.gmra.mxu1 %v3574_v13  ;;  %3081 = vmatprep.mubr.f32.mxu0 %v1467_v51  ;;  %v3684_v51 = vsub.f32 %v1386_v44, %v3677_v47 }
 0x13b   :  { %3095 = vmatprep.mubr.f32.mxu1 %v3657_v48 }
 0x1d8   :  { %v2999_v52 = vpop.f32.mrf.mxu0 }
 0x1d9   :  { %v820_v0 = vadd.f32 %v2999_v52, %v710_v63 }
 0x1da   :  { %v809_v53 = vpop.f32.mrf.mxu0 }
 0x1db   :  { %v810_v3 = vadd.f32 %v809_v53, %v705_v2  ;;  %v3686_v53 = vand.u32 4294901760, %v1392_v9 }
 0x1dd   :  { %v3002_v54 = vpop.f32.mrf.mxu0 }
 0x1de   :  { %v840_v6 = vadd.f32 %v3002_v54, %v720_v57  ;;  %v1475_v57 = vand.u32 4294901760, %v3684_v51 }
 0x1df   :  { %v829_v55 = vpop.f32.mrf.mxu0 }
 0x1e0   :  { %v830_v13 = vadd.f32 %v829_v55, %v715_v60  ;;  %v3697_v60 = vsub.f32 %v1392_v9, %v3686_v53  ;;  %v1476_v2 = vsub.f32 %v3684_v51, %v1475_v57 }
 0x1e1   :  { %v3013_v56 = vpop.f32.mrf.mxu1 }
 0x1e2   :  { %v937_v4 = vadd.f32 %v3013_v56, %v820_v0  ;;  %v3691_v56 = vsub.f32 %v1389_v8, %v3681_v50 }
 0x1e3   :  { %v930_v58 = vpop.f32.mrf.mxu1  ;;  %v3027_v59 = vpop.f32.mrf.mxu0 }
 0x1e4   :  { %v931_v10 = vadd.f32 %v930_v58, %v810_v3  ;;  %v1036_v14 = vadd.f32 %v3027_v59, %v937_v4  ;;  %v1485_v63 = vand.u32 4294901760, %v3691_v56  ;;  %v1495_v4 = vand.u32 4294901760, %v3697_v60 }
 0x1e5   :  { %v1028_v62 = vpop.f32.mrf.mxu0 }
 0x1e6   :  { %v1029_v18 = vadd.f32 %v1028_v62, %v931_v10 }
 0x1e7   :  { %v3016_v61 = vpop.f32.mrf.mxu1 }
 0x1e8   :  { %v949_v15 = vadd.f32 %v3016_v61, %v840_v6 }
 0x1e9   :  { %v942_v1 = vpop.f32.mrf.mxu1 }
 0x1ea   :  { %v943_v19 = vadd.f32 %v942_v1, %v830_v13  ;;  %v1477_v13 = vand.u32 4294901760, %v1476_v2 }
 0x1eb   :  { %v3030_v5 = vpop.f32.mrf.mxu0 }
 0x1ec   :  { %v1050_v23 = vadd.f32 %v3030_v5, %v949_v15 }
 0x1ed   :  { %v1042_v11 = vpop.f32.mrf.mxu0  ;;  %v3041_v12 = vpop.f32.mrf.mxu1 }
 0x1ee   :  { %v1135_v20 = vadd.f32 %v3041_v12, %v1036_v14  ;;  %v1043_v27 = vadd.f32 %v1042_v11, %v943_v19  ;;  %v1486_v11 = vsub.f32 %v3691_v56, %v1485_v63 }
 0x1ef   :  { %v1126_v16 = vpop.f32.mrf.mxu1  ;;  %v3055_v17 = vpop.f32.mrf.mxu0 }
 0x1f0   :  { %v1127_v24 = vadd.f32 %v1126_v16, %v1029_v18  ;;  %v1240_v28 = vadd.f32 %v3055_v17, %v1135_v20  ;;  %v1496_v16 = vsub.f32 %v3697_v60, %v1495_v4  ;;  %v1487_v20 = vand.u32 4294901760, %v1486_v11 }
 0x1f1   :  { %v1233_v21 = vpop.f32.mrf.mxu0 }
 0x1f2   :  { %v3044_v22 = vpop.f32.mrf.mxu1  ;;  %v1234_v31 = vadd.f32 %v1233_v21, %v1127_v24 }
 0x1f3   :  { %v3058_v26 = vpop.f32.mrf.mxu0  ;;  %v1151_v29 = vadd.f32 %v3044_v22, %v1050_v23  ;;  %v1497_v23 = vand.u32 4294901760, %v1496_v16 }
 0x1f4   :  { %v1142_v25 = vpop.f32.mrf.mxu1 }
 0x1f5   :  { %v1143_v32 = vadd.f32 %v1142_v25, %v1043_v27  ;;  %v1245_v34 = vpop.f32.mrf.mxu0  ;;  %v1252_v36 = vadd.f32 %v3058_v26, %v1151_v29 }
 0x1f6   :  { %v3069_v30 = vpop.f32.mrf.mxu1 }
 0x1f7   :  { %v1333_v33 = vadd.f32 %v3069_v30, %v1240_v28  ;;  %v1246_v39 = vadd.f32 %v1245_v34, %v1143_v32 }
 0x1f8   :  { %v1326_v35 = vpop.f32.mrf.mxu1 }
 0x1f9   :  { %3256 = vtanh.f32 %v1333_v33  ;;  %v1327_v37 = vadd.f32 %v1326_v35, %v1234_v31 }
 0x1fa   :  { %v3072_v38 = vpop.f32.mrf.mxu1 }
 0x1fb   :  { %3258 = vtanh.f32 %v1327_v37  ;;  %v1345_v40 = vadd.f32 %v3072_v38, %v1252_v36  ;;  %v1380_v36 = vpop.permute.xlu0 %1379 }
 0x1fc   :  { %v1338_v42 = vpop.f32.mrf.mxu1 }
 0x1fd   :  { %3260 = vtanh.f32 %v1345_v40  ;;  %v1339_v43 = vadd.f32 %v1338_v42, %v1246_v39  ;;  %v1375_v39 = vpop.permute.xlu1 %1374 }
 0x1ff   :  { %3262 = vtanh.f32 %v1339_v43  ;;  %v1370_v42 = vpop.permute.xlu0 %1369 }
 0x201   :  { %v1365_v45 = vpop.permute.xlu1 %1364 }
 0x206   :  { %v3257_v52 = vpop.eup %3256 }
 0x207   :  { %v3688_v55 = vand.u32 4294901760, %v3257_v52 }
 0x208   :  { %v3259_v54 = vpop.eup %3258 }
 0x209   :  { %v3694_v59 = vand.u32 4294901760, %v3259_v54  ;;  %v1543_v0 = vsub.f32 %v3257_v52, %v3688_v55 }
 0x20a   :  { %v3261_v58 = vpop.eup %3260 }
 0x20b   :  { %v3699_v61 = vand.u32 4294901760, %v3261_v58  ;;  %v1550_v5 = vsub.f32 %v3259_v54, %v3694_v59  ;;  %v1544_v12 = vand.u32 4294901760, %v1543_v0 }
 0x20c   :  { %v3263_v62 = vpop.eup %3262 }
 0x20d   :  { %v3703_v1 = vand.u32 4294901760, %v3263_v62  ;;  %3073 = vmatprep.subr.mxu0 %v3699_v61  ;;  %v1529_v3 = vsub.f32 %v3261_v58, %v3699_v61  ;;  %v1551_v17 = vand.u32 4294901760, %v1550_v5  ;;  %v1545_v21 = vsub.f32 %v1543_v0, %v1544_v12 }
 0x20e   :  { %3074 = vmatpush3.msra.mxu0 %v3699_v61 }
 0x20f   :  { %3075 = vmatprep.subr.mxu0 %v3703_v1  ;;  %v1530_v6 = vand.u32 4294901760, %v1529_v3  ;;  %v1536_v10 = vsub.f32 %v3263_v62, %v3703_v1  ;;  %v1552_v24 = vsub.f32 %v1550_v5, %v1551_v17  ;;  %v1546_v25 = vand.u32 4294901760, %v1545_v21 }
 0x210   :  { %3076 = vmatpush3.msra.mxu0 %v3703_v1 }
 0x211   :  { %3077 = vmatprep.subr.mxu0 %v3688_v55  ;;  %v1531_v14 = vsub.f32 %v1529_v3, %v1530_v6  ;;  %v1537_v15 = vand.u32 4294901760, %v1536_v10  ;;  %v1553_v26 = vand.u32 4294901760, %v1552_v24  ;;  %v2707_v24 = vld [vmem:[%s3884_s1 + $0x70] sm:$0xff] }
 0x212   :  { %3078 = vmatpush3.msra.mxu0 %v3688_v55 }
 0x213   :  { %3079 = vmatprep.subr.mxu0 %v3694_v59  ;;  %v1532_v18 = vand.u32 4294901760, %v1531_v14  ;;  %v1538_v19 = vsub.f32 %v1536_v10, %v1537_v15 }
 0x214   :  { %3080 = vmatpush3.msra.mxu0 %v3694_v59 }
 0x215   :  { %3082 = vmatmul.mubr.f32.vlgmr.msra.gmra.mxu0 %v1477_v13  ;;  %3087 = vmatprep.subr.mxu1 %v1532_v18  ;;  %v1539_v22 = vand.u32 4294901760, %v1538_v19 }
 0x216   :  { %3101 = vmatprep.subr.mxu0 %v1529_v3  ;;  %3088 = vmatpush3.msra.mxu1 %v1532_v18 }
 0x217   :  { %3102 = vmatpush3.msra.mxu0 %v1529_v3  ;;  %3089 = vmatprep.subr.mxu1 %v1539_v22 }
 0x218   :  { %3103 = vmatprep.subr.mxu0 %v1536_v10  ;;  %3084 = vmatprep.mubr.f32.mxu0 %v1487_v20  ;;  %v2706_v20 = vld [vmem:[%s3884_s1 + $0x68] sm:$0xff] }
 0x219   :  { %3090 = vmatpush3.msra.mxu1 %v1539_v22  ;;  %3104 = vmatpush3.msra.mxu0 %v1536_v10 }
 0x21a   :  { %3085 = vmatmul.mubr.f32.gmra.mxu0 %v1497_v23  ;;  %3091 = vmatprep.subr.mxu1 %v1546_v25  ;;  %v2046_v23 = vsel %vm61_vm0, %v2706_v20, 0 }
 0x21b   :  { %3105 = vmatprep.subr.mxu0 %v1543_v0  ;;  %3092 = vmatpush3.msra.mxu1 %v1546_v25  ;;  %v2708_v25 = vld [vmem:[%s3884_s1 + $0x78] sm:$0xff] }
 0x21c   :  { %3106 = vmatpush3.msra.mxu0 %v1543_v0  ;;  %3093 = vmatprep.subr.mxu1 %v1553_v26 }
 0x21d   :  { %3107 = vmatprep.subr.mxu0 %v1550_v5  ;;  %3094 = vmatpush3.msra.mxu1 %v1553_v26  ;;  %v3789_v26 = vand.u32 4294901760, %v2046_v23 }
 0x21e   :  { %3108 = vmatpush3.msra.mxu0 %v1550_v5  ;;  %3096 = vmatmul.mubr.f32.vlgmr.msra.gmra.mxu1 %v3677_v47 }
 0x21f   :  { %3109 = vmatprep.mubr.f32.mxu0 %v3660_v49  ;;  %3115 = vmatprep.subr.mxu1 %v3699_v61  ;;  %v2705_v49 = vld [vmem:[%s3884_s1 + $0x60] sm:$0xff]  ;;  %s3320_s1 = smov [#allocation5]  }
 0x220   :  { %3129 = vmatprep.subr.mxu0 %v1530_v6  ;;  %3110 = vmatmul.mubr.f32.vlgmr.msra.gmra.mxu0 %v3684_v51  ;;  %s2677_s29 = sshll.u32 %s3320_s1, 4  ;;  %s2678_s29 = int_to_ptr.vmem [resolvable:$true] %s2677_s29 }
 0x221   :  { %3116 = vmatpush3.msra.mxu1 %v3699_v61  ;;  %3130 = vmatpush3.msra.mxu0 %v1530_v6  ;;  %s3292_s30 = scalar_lea.vmem %s2678_s29, 512  ;;  %p3297_p6 = scmp.lt.s32.totalorder %s2678_s29, %s2678_s29 }
 0x222   :  { %3117 = vmatprep.subr.mxu1 %v3703_v1  ;;  %3131 = vmatprep.subr.mxu0 %v1537_v15  ;;  %p3293_p5 = scmp.ne.s32.totalorder %s2678_s29, %s3292_s30  ;;  %p3298_p7 = scmp.lt.s32.totalorder %s3292_s30, %s3292_s30 }
 0x223   :  { %3098 = vmatprep.mubr.f32.mxu1 %v3681_v50  ;;  %3118 = vmatpush3.msra.mxu1 %v3703_v1 }
 0x224   :  { %3132 = vmatpush3.msra.mxu0 %v1537_v15  ;;  %3099 = vmatmul.mubr.f32.gmra.mxu1 %v3686_v53  ;;  %p3299_p8 = por %p3298_p7, %p3297_p6 }
 0x225   :  { %3119 = vmatprep.subr.mxu1 %v3688_v55  ;;  %3133 = vmatprep.subr.mxu0 %v1544_v12 }
 0x226   :  { %3112 = vmatprep.mubr.f32.mxu0 %v3691_v56  ;;  %3120 = vmatpush3.msra.mxu1 %v3688_v55  ;;  %p3300_p9 = pnand %p3299_p8, %p3293_p5 }
 0x227   :  { %3134 = vmatpush3.msra.mxu0 %v1544_v12  ;;  %3121 = vmatprep.subr.mxu1 %v3694_v59 }
 0x228   :  { %3113 = vmatmul.mubr.f32.gmra.mxu0 %v3697_v60  ;;  %3135 = vmatprep.subr.mxu0 %v1551_v17 }
 0x229   :  { %3122 = vmatpush3.msra.mxu1 %v3694_v59  ;;  %3123 = vmatprep.mubr.f32.mxu1 %v1465_v7  ;;  %v2043_v7 = vsel %vm61_vm0, %v2705_v49, 0  ;;  %v2049_v49 = vsel %vm61_vm0, %v2707_v24, 0 }
 0x22a   :  { %3136 = vmatpush3.msra.mxu0 %v1551_v17  ;;  %3124 = vmatmul.mubr.f32.vlgmr.msra.gmra.mxu1 %v1475_v57  ;;  %v3769_v27 = vand.u32 4294901760, %v2043_v7 }
 0x22b   :  { %3143 = vmatprep.subr.mxu1 %v3699_v61  ;;  %3137 = vmatprep.mubr.f32.mxu0 %v3657_v48 }
 0x22c   :  { %3144 = vmatpush3.msra.mxu1 %v3699_v61  ;;  %3138 = vmatmul.mubr.f32.vlgmr.msra.gmra.mxu0 %v3677_v47  ;;  %v3772_v28 = vsub.f32 %v2043_v7, %v3769_v27  ;;  %v2052_v7 = vsel %vm61_vm0, %v2708_v25, 0 }
 0x22d   :  { %3145 = vmatprep.subr.mxu1 %v3703_v1  ;;  %3126 = vmatprep.mubr.f32.mxu1 %v1485_v63 }
 0x22e   :  { %3146 = vmatpush3.msra.mxu1 %v3703_v1  ;;  %3140 = vmatprep.mubr.f32.mxu0 %v3681_v50 }
 0x22f   :  { %3127 = vmatmul.mubr.f32.gmra.mxu1 %v1495_v4  ;;  %3147 = vmatprep.subr.mxu1 %v3688_v55 }
 0x230   :  { %3148 = vmatpush3.msra.mxu1 %v3688_v55  ;;  %3141 = vmatmul.mubr.f32.gmra.mxu0 %v3686_v53 }
 0x231   :  { %3149 = vmatprep.subr.mxu1 %v3694_v59  ;;  %3151 = vmatprep.mubr.f32.mxu1 %v3657_v48  ;;  %v2125_v48 = vand.u32 4294901760, %v3772_v28 }
 0x232   :  { %3150 = vmatpush3.msra.mxu1 %v3694_v59 }
 0x233   :  { %3152 = vmatmul.mubr.f32.vlgmr.msra.gmra.mxu1 %v3677_v47  ;;  %v2126_v29 = vsub.f32 %v3772_v28, %v2125_v48 }
 0x234   :  { %3154 = vmatprep.mubr.f32.mxu1 %v3681_v50 }
 0x235   :  { %v2127_v30 = vand.u32 4294901760, %v2126_v29  ;;  %v3793_v29 = vand.u32 4294901760, %v2049_v49 }
 0x237   :  { %3155 = vmatmul.mubr.f32.gmra.mxu1 %v3686_v53  ;;  %3165 = vmatprep.mubr.f32.mxu0 %v2127_v30  ;;  %v3796_v30 = vsub.f32 %v2046_v23, %v3789_v26 }
 0x238   :  { %3179 = vmatprep.mubr.f32.mxu1 %v3769_v27 }
 0x2d5   :  { %v3083_v31 = vpop.f32.mrf.mxu0 }
 0x2d6   :  { %v1480_v43 = vadd.f32 %v3083_v31, %v1370_v42 }
 0x2d7   :  { %v1469_v32 = vpop.f32.mrf.mxu0 }
 0x2d8   :  { %v1470_v46 = vadd.f32 %v1469_v32, %v1365_v45  ;;  %v3798_v32 = vand.u32 4294901760, %v2052_v7 }
 0x2da   :  { %v3086_v33 = vpop.f32.mrf.mxu0 }
 0x2db   :  { %v1500_v9 = vadd.f32 %v3086_v33, %v1380_v36  ;;  %v2135_v36 = vand.u32 4294901760, %v3796_v30 }
 0x2dc   :  { %v1489_v34 = vpop.f32.mrf.mxu0 }
 0x2dd   :  { %v1490_v53 = vadd.f32 %v1489_v34, %v1375_v39  ;;  %v3809_v39 = vsub.f32 %v2052_v7, %v3798_v32  ;;  %v2136_v45 = vsub.f32 %v3796_v30, %v2135_v36 }
 0x2de   :  { %v3097_v35 = vpop.f32.mrf.mxu1 }
 0x2df   :  { %v1597_v47 = vadd.f32 %v3097_v35, %v1480_v43  ;;  %v3803_v35 = vsub.f32 %v2049_v49, %v3793_v29 }
 0x2e0   :  { %v1590_v37 = vpop.f32.mrf.mxu1  ;;  %v3111_v38 = vpop.f32.mrf.mxu0 }
 0x2e1   :  { %v1591_v50 = vadd.f32 %v1590_v37, %v1470_v46  ;;  %v1696_v54 = vadd.f32 %v3111_v38, %v1597_v47  ;;  %v2145_v42 = vand.u32 4294901760, %v3803_v35  ;;  %v2155_v47 = vand.u32 4294901760, %v3809_v39 }
 0x2e2   :  { %v1688_v41 = vpop.f32.mrf.mxu0 }
 0x2e3   :  { %v1689_v58 = vadd.f32 %v1688_v41, %v1591_v50 }
 0x2e4   :  { %v3100_v40 = vpop.f32.mrf.mxu1 }
 0x2e5   :  { %v1609_v55 = vadd.f32 %v3100_v40, %v1500_v9 }
 0x2e6   :  { %v1602_v44 = vpop.f32.mrf.mxu1 }
 0x2e7   :  { %v1603_v59 = vadd.f32 %v1602_v44, %v1490_v53  ;;  %v2137_v53 = vand.u32 4294901760, %v2136_v45 }
 0x2e8   :  { %v3114_v8 = vpop.f32.mrf.mxu0 }
 0x2e9   :  { %v1710_v63 = vadd.f32 %v3114_v8, %v1609_v55 }
 0x2ea   :  { %v1702_v51 = vpop.f32.mrf.mxu0  ;;  %v3125_v52 = vpop.f32.mrf.mxu1 }
 0x2eb   :  { %v1795_v60 = vadd.f32 %v3125_v52, %v1696_v54  ;;  %v1703_v3 = vadd.f32 %v1702_v51, %v1603_v59  ;;  %v2146_v51 = vsub.f32 %v3803_v35, %v2145_v42 }
 0x2ec   :  { %v1786_v56 = vpop.f32.mrf.mxu1  ;;  %v3139_v57 = vpop.f32.mrf.mxu0 }
 0x2ed   :  { %v1787_v0 = vadd.f32 %v1786_v56, %v1689_v58  ;;  %v1900_v4 = vadd.f32 %v3139_v57, %v1795_v60  ;;  %v2156_v56 = vsub.f32 %v3809_v39, %v2155_v47  ;;  %v2147_v60 = vand.u32 4294901760, %v2146_v51 }
 0x2ee   :  { %v1893_v61 = vpop.f32.mrf.mxu0 }
 0x2ef   :  { %v3128_v62 = vpop.f32.mrf.mxu1  ;;  %v1894_v10 = vadd.f32 %v1893_v61, %v1787_v0 }
 0x2f0   :  { %v3142_v2 = vpop.f32.mrf.mxu0  ;;  %v1811_v5 = vadd.f32 %v3128_v62, %v1710_v63  ;;  %v2157_v63 = vand.u32 4294901760, %v2156_v56 }
 0x2f1   :  { %v1802_v1 = vpop.f32.mrf.mxu1 }
 0x2f2   :  { %v1803_v11 = vadd.f32 %v1802_v1, %v1703_v3  ;;  %v1905_v13 = vpop.f32.mrf.mxu0  ;;  %v1912_v15 = vadd.f32 %v3142_v2, %v1811_v5 }
 0x2f3   :  { %v3153_v6 = vpop.f32.mrf.mxu1 }
 0x2f4   :  { %v1993_v12 = vadd.f32 %v3153_v6, %v1900_v4  ;;  %v1906_v18 = vadd.f32 %v1905_v13, %v1803_v11  ;;  %v2030_v11 = vpop.permute.xlu1 %2029 }
 0x2f5   :  { %v1986_v14 = vpop.f32.mrf.mxu1 }
 0x2f6   :  { %3264 = vtanh.f32 %v1993_v12  ;;  %v1987_v16 = vadd.f32 %v1986_v14, %v1894_v10  ;;  %v2025_v14 = vpop.permute.xlu0 %2024 }
 0x2f7   :  { %v3156_v17 = vpop.f32.mrf.mxu1 }
 0x2f8   :  { %3266 = vtanh.f32 %v1987_v16  ;;  %v2005_v19 = vadd.f32 %v3156_v17, %v1912_v15 }
 0x2f9   :  { %v1998_v21 = vpop.f32.mrf.mxu1 }
 0x2fa   :  { %3268 = vtanh.f32 %v2005_v19  ;;  %v1999_v22 = vadd.f32 %v1998_v21, %v1906_v18  ;;  %v2040_v19 = vpop.permute.xlu1 %2039  ;;  %v2035_v24 = vpop.permute.xlu0 %2034 }
 0x2fc   :  { %3270 = vtanh.f32 %v1999_v22 }
 0x303   :  { %v3265_v31 = vpop.eup %3264 }
 0x304   :  { %v3800_v34 = vand.u32 4294901760, %v3265_v31 }
 0x305   :  { %v3267_v33 = vpop.eup %3266 }
 0x306   :  { %v3806_v38 = vand.u32 4294901760, %v3267_v33  ;;  %v2203_v43 = vsub.f32 %v3265_v31, %v3800_v34 }
 0x307   :  { %v3269_v37 = vpop.eup %3268 }
 0x308   :  { %v3811_v40 = vand.u32 4294901760, %v3269_v37  ;;  %v2210_v8 = vsub.f32 %v3267_v33, %v3806_v38  ;;  %v2204_v52 = vand.u32 4294901760, %v2203_v43 }
 0x309   :  { %v3271_v41 = vpop.eup %3270 }
 0x30a   :  { %v3815_v44 = vand.u32 4294901760, %v3271_v41  ;;  %3157 = vmatprep.subr.mxu0 %v3811_v40  ;;  %v2189_v46 = vsub.f32 %v3269_v37, %v3811_v40  ;;  %v2211_v57 = vand.u32 4294901760, %v2210_v8  ;;  %v2205_v61 = vsub.f32 %v2203_v43, %v2204_v52 }
 0x30b   :  { %3158 = vmatpush3.msra.mxu0 %v3811_v40 }
 0x30c   :  { %3159 = vmatprep.subr.mxu0 %v3815_v44  ;;  %v2190_v9 = vand.u32 4294901760, %v2189_v46  ;;  %v2196_v50 = vsub.f32 %v3271_v41, %v3815_v44  ;;  %v2212_v0 = vsub.f32 %v2210_v8, %v2211_v57  ;;  %v2206_v1 = vand.u32 4294901760, %v2205_v61 }
 0x30d   :  { %3160 = vmatpush3.msra.mxu0 %v3815_v44 }
 0x30e   :  { %3161 = vmatprep.subr.mxu0 %v3800_v34  ;;  %v2191_v54 = vsub.f32 %v2189_v46, %v2190_v9  ;;  %v2197_v55 = vand.u32 4294901760, %v2196_v50  ;;  %v2213_v2 = vand.u32 4294901760, %v2212_v0 }
 0x30f   :  { %3162 = vmatpush3.msra.mxu0 %v3800_v34 }
 0x310   :  { %3163 = vmatprep.subr.mxu0 %v3806_v38  ;;  %v2192_v58 = vand.u32 4294901760, %v2191_v54  ;;  %v2198_v59 = vsub.f32 %v2196_v50, %v2197_v55 }
 0x311   :  { %3164 = vmatpush3.msra.mxu0 %v3806_v38 }
 0x312   :  { %3166 = vmatmul.mubr.f32.vlgmr.msra.gmra.mxu0 %v2137_v53  ;;  %3171 = vmatprep.subr.mxu1 %v2192_v58  ;;  %v2199_v62 = vand.u32 4294901760, %v2198_v59 }
 0x313   :  { %3185 = vmatprep.subr.mxu0 %v2189_v46  ;;  %3172 = vmatpush3.msra.mxu1 %v2192_v58 }
 0x314   :  { %3186 = vmatpush3.msra.mxu0 %v2189_v46  ;;  %3173 = vmatprep.subr.mxu1 %v2199_v62 }
 0x315   :  { %3187 = vmatprep.subr.mxu0 %v2196_v50  ;;  %3168 = vmatprep.mubr.f32.mxu0 %v2147_v60 }
 0x316   :  { %3174 = vmatpush3.msra.mxu1 %v2199_v62  ;;  %3188 = vmatpush3.msra.mxu0 %v2196_v50 }
 0x317   :  { %3169 = vmatmul.mubr.f32.gmra.mxu0 %v2157_v63  ;;  %3175 = vmatprep.subr.mxu1 %v2206_v1 }
 0x318   :  { %3189 = vmatprep.subr.mxu0 %v2203_v43  ;;  %3176 = vmatpush3.msra.mxu1 %v2206_v1 }
 0x319   :  { %3190 = vmatpush3.msra.mxu0 %v2203_v43  ;;  %3177 = vmatprep.subr.mxu1 %v2213_v2 }
 0x31a   :  { %3191 = vmatprep.subr.mxu0 %v2210_v8  ;;  %3178 = vmatpush3.msra.mxu1 %v2213_v2 }
 0x31b   :  { %3192 = vmatpush3.msra.mxu0 %v2210_v8  ;;  %3180 = vmatmul.mubr.f32.vlgmr.msra.gmra.mxu1 %v3789_v26 }
 0x31c   :  { %3193 = vmatprep.mubr.f32.mxu0 %v3772_v28  ;;  %3199 = vmatprep.subr.mxu1 %v3811_v40 }
 0x31d   :  { %3213 = vmatprep.subr.mxu0 %v2190_v9  ;;  %3194 = vmatmul.mubr.f32.vlgmr.msra.gmra.mxu0 %v3796_v30 }
 0x31e   :  { %3200 = vmatpush3.msra.mxu1 %v3811_v40  ;;  %3214 = vmatpush3.msra.mxu0 %v2190_v9 }
 0x31f   :  { %3201 = vmatprep.subr.mxu1 %v3815_v44  ;;  %3215 = vmatprep.subr.mxu0 %v2197_v55 }
 0x320   :  { %3182 = vmatprep.mubr.f32.mxu1 %v3793_v29  ;;  %3202 = vmatpush3.msra.mxu1 %v3815_v44 }
 0x321   :  { %3216 = vmatpush3.msra.mxu0 %v2197_v55  ;;  %3183 = vmatmul.mubr.f32.gmra.mxu1 %v3798_v32 }
 0x322   :  { %3203 = vmatprep.subr.mxu1 %v3800_v34  ;;  %3217 = vmatprep.subr.mxu0 %v2204_v52 }
 0x323   :  { %3196 = vmatprep.mubr.f32.mxu0 %v3803_v35  ;;  %3204 = vmatpush3.msra.mxu1 %v3800_v34 }
 0x324   :  { %3218 = vmatpush3.msra.mxu0 %v2204_v52  ;;  %3205 = vmatprep.subr.mxu1 %v3806_v38 }
 0x325   :  { %3197 = vmatmul.mubr.f32.gmra.mxu0 %v3809_v39  ;;  %3219 = vmatprep.subr.mxu0 %v2211_v57 }
 0x326   :  { %3206 = vmatpush3.msra.mxu1 %v3806_v38  ;;  %3207 = vmatprep.mubr.f32.mxu1 %v2125_v48 }
 0x327   :  { %3220 = vmatpush3.msra.mxu0 %v2211_v57  ;;  %3208 = vmatmul.mubr.f32.vlgmr.msra.gmra.mxu1 %v2135_v36 }
 0x328   :  { %3227 = vmatprep.subr.mxu1 %v3811_v40  ;;  %3221 = vmatprep.mubr.f32.mxu0 %v3769_v27 }
 0x329   :  { %3228 = vmatpush3.msra.mxu1 %v3811_v40  ;;  %3222 = vmatmul.mubr.f32.vlgmr.msra.gmra.mxu0 %v3789_v26 }
 0x32a   :  { %3229 = vmatprep.subr.mxu1 %v3815_v44  ;;  %3210 = vmatprep.mubr.f32.mxu1 %v2145_v42 }
 0x32b   :  { %3230 = vmatpush3.msra.mxu1 %v3815_v44  ;;  %3224 = vmatprep.mubr.f32.mxu0 %v3793_v29 }
 0x32c   :  { %3211 = vmatmul.mubr.f32.gmra.mxu1 %v2155_v47  ;;  %3231 = vmatprep.subr.mxu1 %v3800_v34 }
 0x32d   :  { %3232 = vmatpush3.msra.mxu1 %v3800_v34  ;;  %3225 = vmatmul.mubr.f32.gmra.mxu0 %v3798_v32 }
 0x32e   :  { %3233 = vmatprep.subr.mxu1 %v3806_v38  ;;  %3235 = vmatprep.mubr.f32.mxu1 %v3769_v27 }
 0x32f   :  { %3234 = vmatpush3.msra.mxu1 %v3806_v38 }
 0x330   :  { %3236 = vmatmul.mubr.f32.vlgmr.msra.gmra.mxu1 %v3789_v26 }
 0x331   :  { %3238 = vmatprep.mubr.f32.mxu1 %v3793_v29 }
 0x334   :  { %3239 = vmatmul.mubr.f32.gmra.mxu1 %v3798_v32 }
 0x3d2   :  { %v3167_v28 = vpop.f32.mrf.mxu0 }
 0x3d3   :  { %v2140_v27 = vadd.f32 %v3167_v28, %v2030_v11 }
 0x3d4   :  { %v2129_v48 = vpop.f32.mrf.mxu0 }
 0x3d5   :  { %v2130_v16 = vadd.f32 %v2129_v48, %v2025_v14 }
 0x3d7   :  { %v3170_v3 = vpop.f32.mrf.mxu0 }
 0x3d8   :  { %v2160_v20 = vadd.f32 %v3170_v3, %v2040_v19 }
 0x3d9   :  { %v2149_v4 = vpop.f32.mrf.mxu0 }
 0x3da   :  { %v2150_v25 = vadd.f32 %v2149_v4, %v2035_v24 }
 0x3db   :  { %v3181_v5 = vpop.f32.mrf.mxu1 }
 0x3dc   :  { %v2257_v17 = vadd.f32 %v3181_v5, %v2140_v27 }
 0x3dd   :  { %v2250_v6 = vpop.f32.mrf.mxu1  ;;  %v3195_v10 = vpop.f32.mrf.mxu0 }
 0x3de   :  { %v2251_v21 = vadd.f32 %v2250_v6, %v2130_v16  ;;  %v2356_v26 = vadd.f32 %v3195_v10, %v2257_v17 }
 0x3df   :  { %v2348_v13 = vpop.f32.mrf.mxu0 }
 0x3e0   :  { %v2349_v30 = vadd.f32 %v2348_v13, %v2251_v21 }
 0x3e1   :  { %v3184_v12 = vpop.f32.mrf.mxu1 }
 0x3e2   :  { %v2269_v49 = vadd.f32 %v3184_v12, %v2160_v20 }
 0x3e3   :  { %v2262_v15 = vpop.f32.mrf.mxu1 }
 0x3e4   :  { %v2263_v31 = vadd.f32 %v2262_v15, %v2150_v25 }
 0x3e5   :  { %v3198_v18 = vpop.f32.mrf.mxu0 }
 0x3e6   :  { %v2370_v35 = vadd.f32 %v3198_v18, %v2269_v49 }
 0x3e7   :  { %v2362_v22 = vpop.f32.mrf.mxu0  ;;  %v3209_v23 = vpop.f32.mrf.mxu1 }
 0x3e8   :  { %v2455_v32 = vadd.f32 %v3209_v23, %v2356_v26  ;;  %v2363_v39 = vadd.f32 %v2362_v22, %v2263_v31 }
 0x3e9   :  { %v2446_v7 = vpop.f32.mrf.mxu1  ;;  %v3223_v29 = vpop.f32.mrf.mxu0 }
 0x3ea   :  { %v2447_v36 = vadd.f32 %v2446_v7, %v2349_v30  ;;  %v2560_v40 = vadd.f32 %v3223_v29, %v2455_v32 }
 0x3eb   :  { %v2553_v33 = vpop.f32.mrf.mxu0 }
 0x3ec   :  { %v3212_v34 = vpop.f32.mrf.mxu1  ;;  %v2554_v43 = vadd.f32 %v2553_v33, %v2447_v36 }
 0x3ed   :  { %v3226_v38 = vpop.f32.mrf.mxu0  ;;  %v2471_v41 = vadd.f32 %v3212_v34, %v2370_v35 }
 0x3ee   :  { %v2462_v37 = vpop.f32.mrf.mxu1 }
 0x3ef   :  { %v2463_v44 = vadd.f32 %v2462_v37, %v2363_v39  ;;  %v2565_v46 = vpop.f32.mrf.mxu0  ;;  %v2572_v8 = vadd.f32 %v3226_v38, %v2471_v41 }
 0x3f0   :  { %v3237_v42 = vpop.f32.mrf.mxu1 }
 0x3f1   :  { %v2653_v45 = vadd.f32 %v3237_v42, %v2560_v40  ;;  %v2566_v51 = vadd.f32 %v2565_v46, %v2463_v44 }
 0x3f2   :  { %v2646_v47 = vpop.f32.mrf.mxu1 }
 0x3f3   :  { %2669 = vst [vmem:[#allocation5 + $0x8] sm:$0xff] %v2653_v45  ;;  %v2647_v9 = vadd.f32 %v2646_v47, %v2554_v43 }
 0x3f4   :  { %v3240_v50 = vpop.f32.mrf.mxu1 }
 0x3f5   :  { %2668 = vst [vmem:[#allocation5] sm:$0xff] %v2647_v9  ;;  %v2665_v52 = vadd.f32 %v3240_v50, %v2572_v8 }
 0x3f6   :  { %v2658_v53 = vpop.f32.mrf.mxu1 }
 0x3f7   :  { %2671 = vst [vmem:[#allocation5 + $0x18] sm:$0xff] %v2665_v52  ;;  %v2659_v54 = vadd.f32 %v2658_v53, %v2566_v51 }
 0x3f9   :  { %2670 = vst [vmem:[#allocation5 + $0x10] sm:$0xff] %v2659_v54 }
 0x3fa   :  { %3303 = shalt.err (!%p3300_p9)
}
 0x3fb   :  { %2683 = dma.vmem_to_hbm [thread:$0]  %s2678_s29, 512, %s3886_s3, [#allocation4], %s3317_s15, %s3317_s15, %s3318_s16  }
 0x3fc   :  { %3314 = dma.done.wait [#allocation4], 512  }
 0x3fd   :  { %3315 = vsyncadd [#allocation4], 4294966784 }
 0x3fe   :  { %2687 = vsyncpa [#allocation3], 1 }
 0x3ff   :  { %2688 = vsyncpa [#allocation4], 1 }

</bundles_post_ra>
